<compile_context>
chip_gen: v7x
topology: tpu7x:2x2x1
jax: 0.10.0
libtpu: 0.0.40
codegen_flags: <defaults>
</compile_context>

<pallas_src>
import functools

import jax
import jax.numpy as jnp
from jax import lax
from jax.experimental import pallas as pl
from jax.experimental.pallas import tpu as pltpu

OUT_LANES = 128  # lane quantum for the padded final projection

# Row layout of the packed f32 bias / LayerNorm blob (`vecs`).
ROW_B_EMB = 0
ROW_B_FC = 1
ROWS_PER_LAYER = 8
OFF_B_QKV = 0
OFF_B_O = 1
OFF_LN1_W = 2
OFF_LN1_B = 3
OFF_B_1 = 4
OFF_B_2 = 5
OFF_LN2_W = 6
OFF_LN2_B = 7


def transformer_regressor_kernel(x_ref, w_io_ref, w_qkv_ref, w_hh_ref, vecs_ref,
                                 out_ref, *, num_layers, num_heads):
    f32 = jnp.float32
    bf16 = jnp.bfloat16

    n, input_dim = x_ref.shape
    hdim = w_qkv_ref.shape[1]
    dh = hdim // num_heads
    out_pad = out_ref.shape[1]
    seq = num_heads * n  # rows of the head-stacked attention core

    def vrow(r, width):                       # (1, width) f32 bias / LN row
        return vecs_ref[r:r + 1, 0:width]

    def layer_norm(h, w, b):                  # two-pass statistics (PyTorch-like)
        mu = jnp.mean(h, axis=-1, keepdims=True)
        d = h - mu
        var = jnp.mean(d * d, axis=-1, keepdims=True)
        return d * lax.rsqrt(var + 1e-5) * w + b

    # Block-diagonal additive mask for head-batched attention (built once).
    ri = lax.broadcasted_iota(jnp.int32, (seq, seq), 0)
    ci = lax.broadcasted_iota(jnp.int32, (seq, seq), 1)
    same = None
    for hd in range(num_heads):
        lo, hi = hd * n, (hd + 1) * n
        blk = (ri >= lo) & (ri < hi) & (ci >= lo) & (ci < hi)
        same = blk if same is None else (same | blk)
    mask_add = jnp.where(same, jnp.float32(0.0), jnp.float32(-1e30))

    # --- embedding --------------------------------------------------------
    w_emb = w_io_ref[0:input_dim, 0:hdim]                        # bf16
    h = jnp.dot(x_ref[...].astype(bf16), w_emb,
                preferred_element_type=f32) + vrow(ROW_B_EMB, hdim)

    for l in range(num_layers):                                  # static unroll
        base = 2 + ROWS_PER_LAYER * l
        h_b = h.astype(bf16)

        # --- fused QKV projection: one (n, H) @ (H, 3H) matmul ------------
        qkv = jnp.dot(h_b, w_qkv_ref[l],
                      preferred_element_type=f32) + vrow(base + OFF_B_QKV, 3 * hdim)

        # stack heads on the sublane axis: (num_heads * n, dh)
        def stack_heads(block):
            return jnp.concatenate(
                [qkv[:, block * hdim + hd * dh: block * hdim + (hd + 1) * dh]
                 for hd in range(num_heads)], axis=0)

        q_s = stack_heads(0)     # 1/sqrt(dh) already folded into the weights
        k_s = stack_heads(1)
        v_s = stack_heads(2)

        # --- head-batched attention core (one scores matmul, one softmax) -
        s = lax.dot_general(q_s.astype(bf16), k_s.astype(bf16),
                            (((1,), (1,)), ((), ())),
                            preferred_element_type=f32)          # (seq, seq)
        s = s + mask_add
        s = s - jnp.max(s, axis=-1, keepdims=True)
        p = jnp.exp(s)
        inv = pl.reciprocal(jnp.sum(p, axis=-1, keepdims=True), approx=True)
        pv = jnp.dot(p.astype(bf16), v_s.astype(bf16),
                     preferred_element_type=f32) * inv           # (seq, dh)

        # un-stack heads back onto lanes, single output projection
        pv_c = jnp.concatenate(
            [pv[hd * n:(hd + 1) * n, :] for hd in range(num_heads)], axis=1)
        attn = jnp.dot(pv_c.astype(bf16), w_hh_ref[l, 0],
                       preferred_element_type=f32) + vrow(base + OFF_B_O, hdim)

        # TODO(synk): dropout omitted (inference / eval semantics).
        h = layer_norm(h + attn,
                       vrow(base + OFF_LN1_W, hdim), vrow(base + OFF_LN1_B, hdim))

        # --- feed-forward (dim_feedforward == hidden_dim, ReLU) -----------
        ff = jnp.dot(h.astype(bf16), w_hh_ref[l, 1],
                     preferred_element_type=f32) + vrow(base + OFF_B_1, hdim)
        ff = jnp.maximum(ff, 0.0)
        ff = jnp.dot(ff.astype(bf16), w_hh_ref[l, 2],
                     preferred_element_type=f32) + vrow(base + OFF_B_2, hdim)
        h = layer_norm(h + ff,
                       vrow(base + OFF_LN2_W, hdim), vrow(base + OFF_LN2_B, hdim))

    # mean(dim=1) over the size-1 batch dim is identity; final projection into a
    # lane-dense padded (n, out_pad) output, sliced back outside the kernel.
    w_fc = w_io_ref[0:hdim, hdim:hdim + out_pad]
    out_ref[...] = jnp.dot(h.astype(bf16), w_fc,
                           preferred_element_type=f32) + vrow(ROW_B_FC, out_pad)


def prepare_kernel_params(p, *, num_heads, out_pad):
    """Pack the logical f32 params into 4 lane-dense kernel operands.

      w_qkv : (L, H, 3H) bf16, columns [Wq | Wk | Wv] (natural head order),
              Q columns pre-scaled by 1/sqrt(dh)
      w_hh  : (L, 3, H, H) bf16, [W_o, W_ff1, W_ff2]
      w_io  : (max(in,H), H + out_pad) bf16, [W_emb | W_fc(padded)]
      vecs  : (2 + 8L, max(3H, out_pad)) f32, one bias / LN vector per row
    """
    bf16 = jnp.bfloat16
    L, H, _ = p["wq"].shape
    input_dim = p["w_emb"].shape[0]
    out_dim = p["wfc"].shape[1]
    dh = H // num_heads
    scale = 1.0 / (dh ** 0.5)

    w_qkv = jnp.concatenate([p["wq"] * scale, p["wk"], p["wv"]],
                            axis=-1).astype(bf16)                    # (L, H, 3H)
    b_qkv = jnp.concatenate([p["bq"] * scale, p["bk"], p["bv"]], axis=-1)  # (L, 3H)

    w_hh = jnp.stack([p["wo"], p["w1"], p["w2"]], axis=1).astype(bf16)     # (L,3,H,H)

    rows = max(input_dim, H)
    w_io = jnp.zeros((rows, H + out_pad), jnp.float32)
    w_io = w_io.at[:input_dim, :H].set(p["w_emb"])
    w_io = w_io.at[:H, H:H + out_dim].set(p["wfc"])
    w_io = w_io.astype(bf16)

    vec_w = max(3 * H, out_pad)
    vecs = jnp.zeros((2 + ROWS_PER_LAYER * L, vec_w), jnp.float32)
    vecs = vecs.at[ROW_B_EMB, :H].set(p["b_emb"])
    vecs = vecs.at[ROW_B_FC, :out_dim].set(p["bfc"])
    for l in range(L):
        base = 2 + ROWS_PER_LAYER * l
        vecs = vecs.at[base + OFF_B_QKV, :3 * H].set(b_qkv[l])
        vecs = vecs.at[base + OFF_B_O, :H].set(p["bo"][l])
        vecs = vecs.at[base + OFF_LN1_W, :H].set(p["ln1_w"][l])
        vecs = vecs.at[base + OFF_LN1_B, :H].set(p["ln1_b"][l])
        vecs = vecs.at[base + OFF_B_1, :H].set(p["b1"][l])
        vecs = vecs.at[base + OFF_B_2, :H].set(p["b2"][l])
        vecs = vecs.at[base + OFF_LN2_W, :H].set(p["ln2_w"][l])
        vecs = vecs.at[base + OFF_LN2_B, :H].set(p["ln2_b"][l])

    return {"w_io": w_io, "w_qkv": w_qkv, "w_hh": w_hh, "vecs": vecs}


def transformer_regressor(x, params, *, num_layers, num_heads, hidden_dim):
    n = x.shape[0]
    out_dim = params["wfc"].shape[1]
    out_pad = out_dim + (-out_dim) % OUT_LANES
    assert params["wq"].shape[1] == hidden_dim

    kp = prepare_kernel_params(params, num_heads=num_heads, out_pad=out_pad)
    args = (x, kp["w_io"], kp["w_qkv"], kp["w_hh"], kp["vecs"])

    vmem = pl.BlockSpec(memory_space=pltpu.MemorySpace.VMEM)
    kernel = functools.partial(transformer_regressor_kernel,
                               num_layers=num_layers, num_heads=num_heads)

    out_padded = pl.pallas_call(
        kernel,
        out_shape=jax.ShapeDtypeStruct((n, out_pad), jnp.float32),
        in_specs=[vmem] * len(args),
        out_specs=vmem,
        compiler_params=pltpu.CompilerParams(vmem_limit_bytes=32 * 1024 * 1024),
    )(*args)
    return out_padded[:, :out_dim]


def make_params(key, input_dim, hidden_dim, output_dim, num_layers):
    """Deterministic synthetic logical parameters (f32, pre-transposed to x @ W)."""
    ks = jax.random.split(key, 20)
    H, L = hidden_dim, num_layers
    u = lambda k, shape, s=0.1: jax.random.uniform(k, shape, jnp.float32, -s, s)
    return {
        "w_emb": u(ks[0], (input_dim, H)),
        "b_emb": u(ks[1], (H,)),
        "wq": u(ks[2], (L, H, H)), "bq": u(ks[3], (L, H)),
        "wk": u(ks[4], (L, H, H)), "bk": u(ks[5], (L, H)),
        "wv": u(ks[6], (L, H, H)), "bv": u(ks[7], (L, H)),
        "wo": u(ks[8], (L, H, H)), "bo": u(ks[9], (L, H)),
        "ln1_w": jnp.ones((L, H), jnp.float32),
        "ln1_b": jnp.zeros((L, H), jnp.float32),
        "ln2_w": jnp.ones((L, H), jnp.float32),
        "ln2_b": jnp.zeros((L, H), jnp.float32),
        "w1": u(ks[10], (L, H, H)), "b1": u(ks[11], (L, H)),
        "w2": u(ks[12], (L, H, H)), "b2": u(ks[13], (L, H)),
        "wfc": u(ks[14], (H, output_dim)),
        "bfc": u(ks[15], (output_dim,)),
    }


def reference_forward(x, p, *, num_layers, num_heads, hidden_dim):
    """Pure-JAX f32 reference mirroring PyTorch eval-mode semantics."""
    def ln(h, w, b):
        mu = h.mean(-1, keepdims=True)
        var = ((h - mu) ** 2).mean(-1, keepdims=True)
        return (h - mu) / jnp.sqrt(var + 1e-5) * w + b

    dh = hidden_dim // num_heads
    h = x @ p["w_emb"] + p["b_emb"]
    for l in range(num_layers):
        q = h @ p["wq"][l] + p["bq"][l]
        k = h @ p["wk"][l] + p["bk"][l]
        v = h @ p["wv"][l] + p["bv"][l]
        outs = []
        for hd in range(num_heads):
            sl = slice(hd * dh, (hd + 1) * dh)
            s = (q[:, sl] @ k[:, sl].T) / jnp.sqrt(dh)
            outs.append(jax.nn.softmax(s, axis=-1) @ v[:, sl])
        attn = jnp.concatenate(outs, -1) @ p["wo"][l] + p["bo"][l]
        h = ln(h + attn, p["ln1_w"][l], p["ln1_b"][l])
        ff = jnp.maximum(h @ p["w1"][l] + p["b1"][l], 0.0) @ p["w2"][l] + p["b2"][l]
        h = ln(h + ff, p["ln2_w"][l], p["ln2_b"][l])
    return h @ p["wfc"] + p["bfc"]


if __name__ == "__main__":
    # Small shapes consistent with the module:
    #   x_train: (batch, input_dim) -> (8, 16); hidden_dim=64, 4 heads,
    #   2 layers, output_dim=4.
    N, INPUT_DIM, HIDDEN_DIM, OUTPUT_DIM = 8, 16, 64, 4
    NUM_HEADS, NUM_LAYERS = 4, 2

    key = jax.random.PRNGKey(0)
    kx, kparams = jax.random.split(key)
    x = jax.random.normal(kx, (N, INPUT_DIM), jnp.float32)
    params = make_params(kparams, INPUT_DIM, HIDDEN_DIM, OUTPUT_DIM, NUM_LAYERS)

    out = transformer_regressor(
        x, params,
        num_layers=NUM_LAYERS, num_heads=NUM_HEADS, hidden_dim=HIDDEN_DIM)
    out = jax.block_until_ready(out)

    ref = reference_forward(
        x, params,
        num_layers=NUM_LAYERS, num_heads=NUM_HEADS, hidden_dim=HIDDEN_DIM)

    assert out.shape == (N, OUTPUT_DIM)
    # Tolerance loosened vs the f32 reference because matmul operands are bf16
    # (f32 accumulation); elementwise / LN / softmax math stays f32.
    assert jnp.allclose(out, ref, atol=2e-2, rtol=2e-2), (
        f"max abs diff = {jnp.max(jnp.abs(out - ref))}")

    print("KERNEL_OK")
</pallas_src>

<mosaic_0001>
module attributes {stable_mosaic.version = 11 : i64} {
  func.func @transformer_regressor_kernel(%arg0: memref<8x16xf32, #tpu.memory_space<vmem>>, %arg1: memref<64x192xbf16, #tpu.memory_space<vmem>>, %arg2: memref<2x64x192xbf16, #tpu.memory_space<vmem>>, %arg3: memref<2x3x64x64xbf16, #tpu.memory_space<vmem>>, %arg4: memref<18x192xf32, #tpu.memory_space<vmem>>, %arg5: memref<8x128xf32, #tpu.memory_space<vmem>>) attributes {dimension_semantics = [], scalar_prefetch = 0 : i64, scratch_operands = 0 : i64, tpu.core_type = #tpu.core_type<tc>} {
    %0 = tpu.iota {dimensions = array<i32: 0>} : vector<32x32xi32>
    %1 = tpu.iota {dimensions = array<i32: 1>} : vector<32x32xi32>
    %c0_i32 = arith.constant 0 : i32
    %2 = vector.broadcast %c0_i32 : i32 to vector<32x32xi32>
    %3 = arith.cmpi sge, %0, %2 : vector<32x32xi32>
    %c8_i32 = arith.constant 8 : i32
    %4 = vector.broadcast %c8_i32 : i32 to vector<32x32xi32>
    %5 = arith.cmpi slt, %0, %4 : vector<32x32xi32>
    %6 = arith.andi %3, %5 : vector<32x32xi1>
    %c0_i32_0 = arith.constant 0 : i32
    %7 = vector.broadcast %c0_i32_0 : i32 to vector<32x32xi32>
    %8 = arith.cmpi sge, %1, %7 : vector<32x32xi32>
    %9 = arith.andi %6, %8 : vector<32x32xi1>
    %c8_i32_1 = arith.constant 8 : i32
    %10 = vector.broadcast %c8_i32_1 : i32 to vector<32x32xi32>
    %11 = arith.cmpi slt, %1, %10 : vector<32x32xi32>
    %12 = arith.andi %9, %11 : vector<32x32xi1>
    %c8_i32_2 = arith.constant 8 : i32
    %13 = vector.broadcast %c8_i32_2 : i32 to vector<32x32xi32>
    %14 = arith.cmpi sge, %0, %13 : vector<32x32xi32>
    %c16_i32 = arith.constant 16 : i32
    %15 = vector.broadcast %c16_i32 : i32 to vector<32x32xi32>
    %16 = arith.cmpi slt, %0, %15 : vector<32x32xi32>
    %17 = arith.andi %14, %16 : vector<32x32xi1>
    %c8_i32_3 = arith.constant 8 : i32
    %18 = vector.broadcast %c8_i32_3 : i32 to vector<32x32xi32>
    %19 = arith.cmpi sge, %1, %18 : vector<32x32xi32>
    %20 = arith.andi %17, %19 : vector<32x32xi1>
    %c16_i32_4 = arith.constant 16 : i32
    %21 = vector.broadcast %c16_i32_4 : i32 to vector<32x32xi32>
    %22 = arith.cmpi slt, %1, %21 : vector<32x32xi32>
    %23 = arith.andi %20, %22 : vector<32x32xi1>
    %24 = arith.ori %12, %23 : vector<32x32xi1>
    %c16_i32_5 = arith.constant 16 : i32
    %25 = vector.broadcast %c16_i32_5 : i32 to vector<32x32xi32>
    %26 = arith.cmpi sge, %0, %25 : vector<32x32xi32>
    %c24_i32 = arith.constant 24 : i32
    %27 = vector.broadcast %c24_i32 : i32 to vector<32x32xi32>
    %28 = arith.cmpi slt, %0, %27 : vector<32x32xi32>
    %29 = arith.andi %26, %28 : vector<32x32xi1>
    %c16_i32_6 = arith.constant 16 : i32
    %30 = vector.broadcast %c16_i32_6 : i32 to vector<32x32xi32>
    %31 = arith.cmpi sge, %1, %30 : vector<32x32xi32>
    %32 = arith.andi %29, %31 : vector<32x32xi1>
    %c24_i32_7 = arith.constant 24 : i32
    %33 = vector.broadcast %c24_i32_7 : i32 to vector<32x32xi32>
    %34 = arith.cmpi slt, %1, %33 : vector<32x32xi32>
    %35 = arith.andi %32, %34 : vector<32x32xi1>
    %36 = arith.ori %24, %35 : vector<32x32xi1>
    %c24_i32_8 = arith.constant 24 : i32
    %37 = vector.broadcast %c24_i32_8 : i32 to vector<32x32xi32>
    %38 = arith.cmpi sge, %0, %37 : vector<32x32xi32>
    %c32_i32 = arith.constant 32 : i32
    %39 = vector.broadcast %c32_i32 : i32 to vector<32x32xi32>
    %40 = arith.cmpi slt, %0, %39 : vector<32x32xi32>
    %41 = arith.andi %38, %40 : vector<32x32xi1>
    %c24_i32_9 = arith.constant 24 : i32
    %42 = vector.broadcast %c24_i32_9 : i32 to vector<32x32xi32>
    %43 = arith.cmpi sge, %1, %42 : vector<32x32xi32>
    %44 = arith.andi %41, %43 : vector<32x32xi1>
    %c32_i32_10 = arith.constant 32 : i32
    %45 = vector.broadcast %c32_i32_10 : i32 to vector<32x32xi32>
    %46 = arith.cmpi slt, %1, %45 : vector<32x32xi32>
    %47 = arith.andi %44, %46 : vector<32x32xi1>
    %48 = arith.ori %36, %47 : vector<32x32xi1>
    %cst = arith.constant 0.000000e+00 : f32
    %cst_11 = arith.constant -1.000000e+30 : f32
    %49 = vector.broadcast %cst : f32 to vector<32x32xf32>
    %50 = vector.broadcast %cst_11 : f32 to vector<32x32xf32>
    %51 = arith.select %48, %49, %50 : vector<32x32xi1>, vector<32x32xf32>
    %c0 = arith.constant 0 : index
    %c0_12 = arith.constant 0 : index
    %52 = vector.load %arg1[%c0, %c0_12] : memref<64x192xbf16, #tpu.memory_space<vmem>>, vector<16x64xbf16>
    %c0_13 = arith.constant 0 : index
    %c0_14 = arith.constant 0 : index
    %53 = vector.load %arg0[%c0_13, %c0_14] : memref<8x16xf32, #tpu.memory_space<vmem>>, vector<8x16xf32>
    %54 = arith.truncf %53 : vector<8x16xf32> to vector<8x16xbf16>
    %cst_15 = arith.constant dense<0.000000e+00> : vector<8x64xf32>
    %55 = tpu.matmul %54, %52, %cst_15 {dimension_numbers = #tpu.dot_dimension_numbers<[1], [0], [0], [1], [0, 0, 1, 1], [], []>} : vector<8x16xbf16>, vector<16x64xbf16>, vector<8x64xf32> -> vector<8x64xf32>
    %c0_16 = arith.constant 0 : index
    %c0_17 = arith.constant 0 : index
    %56 = vector.load %arg4[%c0_16, %c0_17] : memref<18x192xf32, #tpu.memory_space<vmem>>, vector<1x64xf32>
    %57 = vector.broadcast %56 : vector<1x64xf32> to vector<8x64xf32>
    %58 = arith.addf %55, %57 : vector<8x64xf32>
    %59 = arith.truncf %58 : vector<8x64xf32> to vector<8x64xbf16>
    %c0_18 = arith.constant 0 : index
    %c0_19 = arith.constant 0 : index
    %c0_20 = arith.constant 0 : index
    %60 = vector.load %arg2[%c0_18, %c0_19, %c0_20] : memref<2x64x192xbf16, #tpu.memory_space<vmem>>, vector<1x64x192xbf16>
    %61 = vector.shape_cast %60 : vector<1x64x192xbf16> to vector<64x192xbf16>
    %cst_21 = arith.constant dense<0.000000e+00> : vector<8x192xf32>
    %62 = tpu.matmul %59, %61, %cst_21 {dimension_numbers = #tpu.dot_dimension_numbers<[1], [0], [0], [1], [0, 0, 1, 1], [], []>} : vector<8x64xbf16>, vector<64x192xbf16>, vector<8x192xf32> -> vector<8x192xf32>
    %c2 = arith.constant 2 : index
    %c0_22 = arith.constant 0 : index
    %63 = vector.load %arg4[%c2, %c0_22] : memref<18x192xf32, #tpu.memory_space<vmem>>, vector<1x192xf32>
    %64 = vector.broadcast %63 : vector<1x192xf32> to vector<8x192xf32>
    %65 = arith.addf %62, %64 : vector<8x192xf32>
    %66 = vector.extract_strided_slice %65 {offsets = [0, 0], sizes = [8, 16], strides = [1, 1]} : vector<8x192xf32> to vector<8x16xf32>
    %67 = vector.extract_strided_slice %65 {offsets = [0, 16], sizes = [8, 16], strides = [1, 1]} : vector<8x192xf32> to vector<8x16xf32>
    %68 = vector.extract_strided_slice %65 {offsets = [0, 32], sizes = [8, 16], strides = [1, 1]} : vector<8x192xf32> to vector<8x16xf32>
    %69 = vector.extract_strided_slice %65 {offsets = [0, 48], sizes = [8, 16], strides = [1, 1]} : vector<8x192xf32> to vector<8x16xf32>
    %70 = tpu.concatenate %66, %67, %68, %69 in 0 : vector<8x16xf32>, vector<8x16xf32>, vector<8x16xf32>, vector<8x16xf32> -> vector<32x16xf32>
    %71 = vector.extract_strided_slice %65 {offsets = [0, 64], sizes = [8, 16], strides = [1, 1]} : vector<8x192xf32> to vector<8x16xf32>
    %72 = vector.extract_strided_slice %65 {offsets = [0, 80], sizes = [8, 16], strides = [1, 1]} : vector<8x192xf32> to vector<8x16xf32>
    %73 = vector.extract_strided_slice %65 {offsets = [0, 96], sizes = [8, 16], strides = [1, 1]} : vector<8x192xf32> to vector<8x16xf32>
    %74 = vector.extract_strided_slice %65 {offsets = [0, 112], sizes = [8, 16], strides = [1, 1]} : vector<8x192xf32> to vector<8x16xf32>
    %75 = tpu.concatenate %71, %72, %73, %74 in 0 : vector<8x16xf32>, vector<8x16xf32>, vector<8x16xf32>, vector<8x16xf32> -> vector<32x16xf32>
    %76 = vector.extract_strided_slice %65 {offsets = [0, 128], sizes = [8, 16], strides = [1, 1]} : vector<8x192xf32> to vector<8x16xf32>
    %77 = vector.extract_strided_slice %65 {offsets = [0, 144], sizes = [8, 16], strides = [1, 1]} : vector<8x192xf32> to vector<8x16xf32>
    %78 = vector.extract_strided_slice %65 {offsets = [0, 160], sizes = [8, 16], strides = [1, 1]} : vector<8x192xf32> to vector<8x16xf32>
    %79 = vector.extract_strided_slice %65 {offsets = [0, 176], sizes = [8, 16], strides = [1, 1]} : vector<8x192xf32> to vector<8x16xf32>
    %80 = tpu.concatenate %76, %77, %78, %79 in 0 : vector<8x16xf32>, vector<8x16xf32>, vector<8x16xf32>, vector<8x16xf32> -> vector<32x16xf32>
    %81 = arith.truncf %70 : vector<32x16xf32> to vector<32x16xbf16>
    %82 = arith.truncf %75 : vector<32x16xf32> to vector<32x16xbf16>
    %cst_23 = arith.constant dense<0.000000e+00> : vector<32x32xf32>
    %83 = tpu.matmul %81, %82, %cst_23 {dimension_numbers = #tpu.dot_dimension_numbers<[1], [1], [0], [0], [0, 0, 1, 0], [], []>} : vector<32x16xbf16>, vector<32x16xbf16>, vector<32x32xf32> -> vector<32x32xf32>
    %84 = arith.addf %83, %51 : vector<32x32xf32>
    %cst_24 = arith.constant dense<0xFF800000> : vector<32xf32>
    %85 = vector.multi_reduction <maximumf>, %84, %cst_24 [1] : vector<32x32xf32> to vector<32xf32>
    %86 = vector.shape_cast %85 : vector<32xf32> to vector<32x1xf32>
    %87 = vector.broadcast %86 : vector<32x1xf32> to vector<32x32xf32>
    %88 = arith.subf %84, %87 : vector<32x32xf32>
    %89 = math.exp %88 : vector<32x32xf32>
    %cst_25 = arith.constant dense<0.000000e+00> : vector<32xf32>
    %90 = vector.multi_reduction <add>, %89, %cst_25 [1] : vector<32x32xf32> to vector<32xf32>
    %91 = vector.shape_cast %90 : vector<32xf32> to vector<32x1xf32>
    %92 = tpu.reciprocal %91 {approx = true} : vector<32x1xf32> -> vector<32x1xf32>
    %93 = arith.truncf %89 : vector<32x32xf32> to vector<32x32xbf16>
    %94 = arith.truncf %80 : vector<32x16xf32> to vector<32x16xbf16>
    %cst_26 = arith.constant dense<0.000000e+00> : vector<32x16xf32>
    %95 = tpu.matmul %93, %94, %cst_26 {dimension_numbers = #tpu.dot_dimension_numbers<[1], [0], [0], [1], [0, 0, 1, 1], [], []>} : vector<32x32xbf16>, vector<32x16xbf16>, vector<32x16xf32> -> vector<32x16xf32>
    %96 = vector.broadcast %92 : vector<32x1xf32> to vector<32x16xf32>
    %97 = arith.mulf %95, %96 : vector<32x16xf32>
    %98 = vector.extract_strided_slice %97 {offsets = [0, 0], sizes = [8, 16], strides = [1, 1]} : vector<32x16xf32> to vector<8x16xf32>
    %99 = vector.extract_strided_slice %97 {offsets = [8, 0], sizes = [8, 16], strides = [1, 1]} : vector<32x16xf32> to vector<8x16xf32>
    %100 = vector.extract_strided_slice %97 {offsets = [16, 0], sizes = [8, 16], strides = [1, 1]} : vector<32x16xf32> to vector<8x16xf32>
    %101 = vector.extract_strided_slice %97 {offsets = [24, 0], sizes = [8, 16], strides = [1, 1]} : vector<32x16xf32> to vector<8x16xf32>
    %102 = tpu.concatenate %98, %99, %100, %101 in 1 : vector<8x16xf32>, vector<8x16xf32>, vector<8x16xf32>, vector<8x16xf32> -> vector<8x64xf32>
    %103 = arith.truncf %102 : vector<8x64xf32> to vector<8x64xbf16>
    %c0_27 = arith.constant 0 : index
    %c0_28 = arith.constant 0 : index
    %c0_29 = arith.constant 0 : index
    %c0_30 = arith.constant 0 : index
    %104 = vector.load %arg3[%c0_27, %c0_28, %c0_29, %c0_30] : memref<2x3x64x64xbf16, #tpu.memory_space<vmem>>, vector<1x1x64x64xbf16>
    %105 = vector.shape_cast %104 : vector<1x1x64x64xbf16> to vector<64x64xbf16>
    %cst_31 = arith.constant dense<0.000000e+00> : vector<8x64xf32>
    %106 = tpu.matmul %103, %105, %cst_31 {dimension_numbers = #tpu.dot_dimension_numbers<[1], [0], [0], [1], [0, 0, 1, 1], [], []>} : vector<8x64xbf16>, vector<64x64xbf16>, vector<8x64xf32> -> vector<8x64xf32>
    %c3 = arith.constant 3 : index
    %c0_32 = arith.constant 0 : index
    %107 = vector.load %arg4[%c3, %c0_32] : memref<18x192xf32, #tpu.memory_space<vmem>>, vector<1x64xf32>
    %108 = vector.broadcast %107 : vector<1x64xf32> to vector<8x64xf32>
    %109 = arith.addf %106, %108 : vector<8x64xf32>
    %110 = arith.addf %58, %109 : vector<8x64xf32>
    %c4 = arith.constant 4 : index
    %c0_33 = arith.constant 0 : index
    %111 = vector.load %arg4[%c4, %c0_33] : memref<18x192xf32, #tpu.memory_space<vmem>>, vector<1x64xf32>
    %c5 = arith.constant 5 : index
    %c0_34 = arith.constant 0 : index
    %112 = vector.load %arg4[%c5, %c0_34] : memref<18x192xf32, #tpu.memory_space<vmem>>, vector<1x64xf32>
    %cst_35 = arith.constant dense<0.000000e+00> : vector<8xf32>
    %113 = vector.multi_reduction <add>, %110, %cst_35 [1] : vector<8x64xf32> to vector<8xf32>
    %114 = vector.shape_cast %113 : vector<8xf32> to vector<8x1xf32>
    %cst_36 = arith.constant 6.400000e+01 : f32
    %115 = vector.broadcast %cst_36 : f32 to vector<8x1xf32>
    %116 = arith.divf %114, %115 : vector<8x1xf32>
    %117 = vector.broadcast %116 : vector<8x1xf32> to vector<8x64xf32>
    %118 = arith.subf %110, %117 : vector<8x64xf32>
    %119 = arith.mulf %118, %118 : vector<8x64xf32>
    %cst_37 = arith.constant dense<0.000000e+00> : vector<8xf32>
    %120 = vector.multi_reduction <add>, %119, %cst_37 [1] : vector<8x64xf32> to vector<8xf32>
    %121 = vector.shape_cast %120 : vector<8xf32> to vector<8x1xf32>
    %cst_38 = arith.constant 6.400000e+01 : f32
    %122 = vector.broadcast %cst_38 : f32 to vector<8x1xf32>
    %123 = arith.divf %121, %122 : vector<8x1xf32>
    %cst_39 = arith.constant 9.99999974E-6 : f32
    %124 = vector.broadcast %cst_39 : f32 to vector<8x1xf32>
    %125 = arith.addf %123, %124 : vector<8x1xf32>
    %126 = math.rsqrt %125 : vector<8x1xf32>
    %127 = vector.broadcast %126 : vector<8x1xf32> to vector<8x64xf32>
    %128 = arith.mulf %118, %127 : vector<8x64xf32>
    %129 = vector.broadcast %111 : vector<1x64xf32> to vector<8x64xf32>
    %130 = arith.mulf %128, %129 : vector<8x64xf32>
    %131 = vector.broadcast %112 : vector<1x64xf32> to vector<8x64xf32>
    %132 = arith.addf %130, %131 : vector<8x64xf32>
    %133 = arith.truncf %132 : vector<8x64xf32> to vector<8x64xbf16>
    %c0_40 = arith.constant 0 : index
    %c1 = arith.constant 1 : index
    %c0_41 = arith.constant 0 : index
    %c0_42 = arith.constant 0 : index
    %134 = vector.load %arg3[%c0_40, %c1, %c0_41, %c0_42] : memref<2x3x64x64xbf16, #tpu.memory_space<vmem>>, vector<1x1x64x64xbf16>
    %135 = vector.shape_cast %134 : vector<1x1x64x64xbf16> to vector<64x64xbf16>
    %cst_43 = arith.constant dense<0.000000e+00> : vector<8x64xf32>
    %136 = tpu.matmul %133, %135, %cst_43 {dimension_numbers = #tpu.dot_dimension_numbers<[1], [0], [0], [1], [0, 0, 1, 1], [], []>} : vector<8x64xbf16>, vector<64x64xbf16>, vector<8x64xf32> -> vector<8x64xf32>
    %c6 = arith.constant 6 : index
    %c0_44 = arith.constant 0 : index
    %137 = vector.load %arg4[%c6, %c0_44] : memref<18x192xf32, #tpu.memory_space<vmem>>, vector<1x64xf32>
    %138 = vector.broadcast %137 : vector<1x64xf32> to vector<8x64xf32>
    %139 = arith.addf %136, %138 : vector<8x64xf32>
    %cst_45 = arith.constant 0.000000e+00 : f32
    %140 = vector.broadcast %cst_45 : f32 to vector<8x64xf32>
    %141 = arith.maximumf %139, %140 : vector<8x64xf32>
    %142 = arith.truncf %141 : vector<8x64xf32> to vector<8x64xbf16>
    %c0_46 = arith.constant 0 : index
    %c2_47 = arith.constant 2 : index
    %c0_48 = arith.constant 0 : index
    %c0_49 = arith.constant 0 : index
    %143 = vector.load %arg3[%c0_46, %c2_47, %c0_48, %c0_49] : memref<2x3x64x64xbf16, #tpu.memory_space<vmem>>, vector<1x1x64x64xbf16>
    %144 = vector.shape_cast %143 : vector<1x1x64x64xbf16> to vector<64x64xbf16>
    %cst_50 = arith.constant dense<0.000000e+00> : vector<8x64xf32>
    %145 = tpu.matmul %142, %144, %cst_50 {dimension_numbers = #tpu.dot_dimension_numbers<[1], [0], [0], [1], [0, 0, 1, 1], [], []>} : vector<8x64xbf16>, vector<64x64xbf16>, vector<8x64xf32> -> vector<8x64xf32>
    %c7 = arith.constant 7 : index
    %c0_51 = arith.constant 0 : index
    %146 = vector.load %arg4[%c7, %c0_51] : memref<18x192xf32, #tpu.memory_space<vmem>>, vector<1x64xf32>
    %147 = vector.broadcast %146 : vector<1x64xf32> to vector<8x64xf32>
    %148 = arith.addf %145, %147 : vector<8x64xf32>
    %149 = arith.addf %132, %148 : vector<8x64xf32>
    %c8 = arith.constant 8 : index
    %c0_52 = arith.constant 0 : index
    %150 = vector.load %arg4[%c8, %c0_52] : memref<18x192xf32, #tpu.memory_space<vmem>>, vector<1x64xf32>
    %c9 = arith.constant 9 : index
    %c0_53 = arith.constant 0 : index
    %151 = vector.load %arg4[%c9, %c0_53] : memref<18x192xf32, #tpu.memory_space<vmem>>, vector<1x64xf32>
    %cst_54 = arith.constant dense<0.000000e+00> : vector<8xf32>
    %152 = vector.multi_reduction <add>, %149, %cst_54 [1] : vector<8x64xf32> to vector<8xf32>
    %153 = vector.shape_cast %152 : vector<8xf32> to vector<8x1xf32>
    %cst_55 = arith.constant 6.400000e+01 : f32
    %154 = vector.broadcast %cst_55 : f32 to vector<8x1xf32>
    %155 = arith.divf %153, %154 : vector<8x1xf32>
    %156 = vector.broadcast %155 : vector<8x1xf32> to vector<8x64xf32>
    %157 = arith.subf %149, %156 : vector<8x64xf32>
    %158 = arith.mulf %157, %157 : vector<8x64xf32>
    %cst_56 = arith.constant dense<0.000000e+00> : vector<8xf32>
    %159 = vector.multi_reduction <add>, %158, %cst_56 [1] : vector<8x64xf32> to vector<8xf32>
    %160 = vector.shape_cast %159 : vector<8xf32> to vector<8x1xf32>
    %cst_57 = arith.constant 6.400000e+01 : f32
    %161 = vector.broadcast %cst_57 : f32 to vector<8x1xf32>
    %162 = arith.divf %160, %161 : vector<8x1xf32>
    %cst_58 = arith.constant 9.99999974E-6 : f32
    %163 = vector.broadcast %cst_58 : f32 to vector<8x1xf32>
    %164 = arith.addf %162, %163 : vector<8x1xf32>
    %165 = math.rsqrt %164 : vector<8x1xf32>
    %166 = vector.broadcast %165 : vector<8x1xf32> to vector<8x64xf32>
    %167 = arith.mulf %157, %166 : vector<8x64xf32>
    %168 = vector.broadcast %150 : vector<1x64xf32> to vector<8x64xf32>
    %169 = arith.mulf %167, %168 : vector<8x64xf32>
    %170 = vector.broadcast %151 : vector<1x64xf32> to vector<8x64xf32>
    %171 = arith.addf %169, %170 : vector<8x64xf32>
    %172 = arith.truncf %171 : vector<8x64xf32> to vector<8x64xbf16>
    %c1_59 = arith.constant 1 : index
    %c0_60 = arith.constant 0 : index
    %c0_61 = arith.constant 0 : index
    %173 = vector.load %arg2[%c1_59, %c0_60, %c0_61] : memref<2x64x192xbf16, #tpu.memory_space<vmem>>, vector<1x64x192xbf16>
    %174 = vector.shape_cast %173 : vector<1x64x192xbf16> to vector<64x192xbf16>
    %cst_62 = arith.constant dense<0.000000e+00> : vector<8x192xf32>
    %175 = tpu.matmul %172, %174, %cst_62 {dimension_numbers = #tpu.dot_dimension_numbers<[1], [0], [0], [1], [0, 0, 1, 1], [], []>} : vector<8x64xbf16>, vector<64x192xbf16>, vector<8x192xf32> -> vector<8x192xf32>
    %c10 = arith.constant 10 : index
    %c0_63 = arith.constant 0 : index
    %176 = vector.load %arg4[%c10, %c0_63] : memref<18x192xf32, #tpu.memory_space<vmem>>, vector<1x192xf32>
    %177 = vector.broadcast %176 : vector<1x192xf32> to vector<8x192xf32>
    %178 = arith.addf %175, %177 : vector<8x192xf32>
    %179 = vector.extract_strided_slice %178 {offsets = [0, 0], sizes = [8, 16], strides = [1, 1]} : vector<8x192xf32> to vector<8x16xf32>
    %180 = vector.extract_strided_slice %178 {offsets = [0, 16], sizes = [8, 16], strides = [1, 1]} : vector<8x192xf32> to vector<8x16xf32>
    %181 = vector.extract_strided_slice %178 {offsets = [0, 32], sizes = [8, 16], strides = [1, 1]} : vector<8x192xf32> to vector<8x16xf32>
    %182 = vector.extract_strided_slice %178 {offsets = [0, 48], sizes = [8, 16], strides = [1, 1]} : vector<8x192xf32> to vector<8x16xf32>
    %183 = tpu.concatenate %179, %180, %181, %182 in 0 : vector<8x16xf32>, vector<8x16xf32>, vector<8x16xf32>, vector<8x16xf32> -> vector<32x16xf32>
    %184 = vector.extract_strided_slice %178 {offsets = [0, 64], sizes = [8, 16], strides = [1, 1]} : vector<8x192xf32> to vector<8x16xf32>
    %185 = vector.extract_strided_slice %178 {offsets = [0, 80], sizes = [8, 16], strides = [1, 1]} : vector<8x192xf32> to vector<8x16xf32>
    %186 = vector.extract_strided_slice %178 {offsets = [0, 96], sizes = [8, 16], strides = [1, 1]} : vector<8x192xf32> to vector<8x16xf32>
    %187 = vector.extract_strided_slice %178 {offsets = [0, 112], sizes = [8, 16], strides = [1, 1]} : vector<8x192xf32> to vector<8x16xf32>
    %188 = tpu.concatenate %184, %185, %186, %187 in 0 : vector<8x16xf32>, vector<8x16xf32>, vector<8x16xf32>, vector<8x16xf32> -> vector<32x16xf32>
    %189 = vector.extract_strided_slice %178 {offsets = [0, 128], sizes = [8, 16], strides = [1, 1]} : vector<8x192xf32> to vector<8x16xf32>
    %190 = vector.extract_strided_slice %178 {offsets = [0, 144], sizes = [8, 16], strides = [1, 1]} : vector<8x192xf32> to vector<8x16xf32>
    %191 = vector.extract_strided_slice %178 {offsets = [0, 160], sizes = [8, 16], strides = [1, 1]} : vector<8x192xf32> to vector<8x16xf32>
    %192 = vector.extract_strided_slice %178 {offsets = [0, 176], sizes = [8, 16], strides = [1, 1]} : vector<8x192xf32> to vector<8x16xf32>
    %193 = tpu.concatenate %189, %190, %191, %192 in 0 : vector<8x16xf32>, vector<8x16xf32>, vector<8x16xf32>, vector<8x16xf32> -> vector<32x16xf32>
    %194 = arith.truncf %183 : vector<32x16xf32> to vector<32x16xbf16>
    %195 = arith.truncf %188 : vector<32x16xf32> to vector<32x16xbf16>
    %cst_64 = arith.constant dense<0.000000e+00> : vector<32x32xf32>
    %196 = tpu.matmul %194, %195, %cst_64 {dimension_numbers = #tpu.dot_dimension_numbers<[1], [1], [0], [0], [0, 0, 1, 0], [], []>} : vector<32x16xbf16>, vector<32x16xbf16>, vector<32x32xf32> -> vector<32x32xf32>
    %197 = arith.addf %196, %51 : vector<32x32xf32>
    %cst_65 = arith.constant dense<0xFF800000> : vector<32xf32>
    %198 = vector.multi_reduction <maximumf>, %197, %cst_65 [1] : vector<32x32xf32> to vector<32xf32>
    %199 = vector.shape_cast %198 : vector<32xf32> to vector<32x1xf32>
    %200 = vector.broadcast %199 : vector<32x1xf32> to vector<32x32xf32>
    %201 = arith.subf %197, %200 : vector<32x32xf32>
    %202 = math.exp %201 : vector<32x32xf32>
    %cst_66 = arith.constant dense<0.000000e+00> : vector<32xf32>
    %203 = vector.multi_reduction <add>, %202, %cst_66 [1] : vector<32x32xf32> to vector<32xf32>
    %204 = vector.shape_cast %203 : vector<32xf32> to vector<32x1xf32>
    %205 = tpu.reciprocal %204 {approx = true} : vector<32x1xf32> -> vector<32x1xf32>
    %206 = arith.truncf %202 : vector<32x32xf32> to vector<32x32xbf16>
    %207 = arith.truncf %193 : vector<32x16xf32> to vector<32x16xbf16>
    %cst_67 = arith.constant dense<0.000000e+00> : vector<32x16xf32>
    %208 = tpu.matmul %206, %207, %cst_67 {dimension_numbers = #tpu.dot_dimension_numbers<[1], [0], [0], [1], [0, 0, 1, 1], [], []>} : vector<32x32xbf16>, vector<32x16xbf16>, vector<32x16xf32> -> vector<32x16xf32>
    %209 = vector.broadcast %205 : vector<32x1xf32> to vector<32x16xf32>
    %210 = arith.mulf %208, %209 : vector<32x16xf32>
    %211 = vector.extract_strided_slice %210 {offsets = [0, 0], sizes = [8, 16], strides = [1, 1]} : vector<32x16xf32> to vector<8x16xf32>
    %212 = vector.extract_strided_slice %210 {offsets = [8, 0], sizes = [8, 16], strides = [1, 1]} : vector<32x16xf32> to vector<8x16xf32>
    %213 = vector.extract_strided_slice %210 {offsets = [16, 0], sizes = [8, 16], strides = [1, 1]} : vector<32x16xf32> to vector<8x16xf32>
    %214 = vector.extract_strided_slice %210 {offsets = [24, 0], sizes = [8, 16], strides = [1, 1]} : vector<32x16xf32> to vector<8x16xf32>
    %215 = tpu.concatenate %211, %212, %213, %214 in 1 : vector<8x16xf32>, vector<8x16xf32>, vector<8x16xf32>, vector<8x16xf32> -> vector<8x64xf32>
    %216 = arith.truncf %215 : vector<8x64xf32> to vector<8x64xbf16>
    %c1_68 = arith.constant 1 : index
    %c0_69 = arith.constant 0 : index
    %c0_70 = arith.constant 0 : index
    %c0_71 = arith.constant 0 : index
    %217 = vector.load %arg3[%c1_68, %c0_69, %c0_70, %c0_71] : memref<2x3x64x64xbf16, #tpu.memory_space<vmem>>, vector<1x1x64x64xbf16>
    %218 = vector.shape_cast %217 : vector<1x1x64x64xbf16> to vector<64x64xbf16>
    %cst_72 = arith.constant dense<0.000000e+00> : vector<8x64xf32>
    %219 = tpu.matmul %216, %218, %cst_72 {dimension_numbers = #tpu.dot_dimension_numbers<[1], [0], [0], [1], [0, 0, 1, 1], [], []>} : vector<8x64xbf16>, vector<64x64xbf16>, vector<8x64xf32> -> vector<8x64xf32>
    %c11 = arith.constant 11 : index
    %c0_73 = arith.constant 0 : index
    %220 = vector.load %arg4[%c11, %c0_73] : memref<18x192xf32, #tpu.memory_space<vmem>>, vector<1x64xf32>
    %221 = vector.broadcast %220 : vector<1x64xf32> to vector<8x64xf32>
    %222 = arith.addf %219, %221 : vector<8x64xf32>
    %223 = arith.addf %171, %222 : vector<8x64xf32>
    %c12 = arith.constant 12 : index
    %c0_74 = arith.constant 0 : index
    %224 = vector.load %arg4[%c12, %c0_74] : memref<18x192xf32, #tpu.memory_space<vmem>>, vector<1x64xf32>
    %c13 = arith.constant 13 : index
    %c0_75 = arith.constant 0 : index
    %225 = vector.load %arg4[%c13, %c0_75] : memref<18x192xf32, #tpu.memory_space<vmem>>, vector<1x64xf32>
    %cst_76 = arith.constant dense<0.000000e+00> : vector<8xf32>
    %226 = vector.multi_reduction <add>, %223, %cst_76 [1] : vector<8x64xf32> to vector<8xf32>
    %227 = vector.shape_cast %226 : vector<8xf32> to vector<8x1xf32>
    %cst_77 = arith.constant 6.400000e+01 : f32
    %228 = vector.broadcast %cst_77 : f32 to vector<8x1xf32>
    %229 = arith.divf %227, %228 : vector<8x1xf32>
    %230 = vector.broadcast %229 : vector<8x1xf32> to vector<8x64xf32>
    %231 = arith.subf %223, %230 : vector<8x64xf32>
    %232 = arith.mulf %231, %231 : vector<8x64xf32>
    %cst_78 = arith.constant dense<0.000000e+00> : vector<8xf32>
    %233 = vector.multi_reduction <add>, %232, %cst_78 [1] : vector<8x64xf32> to vector<8xf32>
    %234 = vector.shape_cast %233 : vector<8xf32> to vector<8x1xf32>
    %cst_79 = arith.constant 6.400000e+01 : f32
    %235 = vector.broadcast %cst_79 : f32 to vector<8x1xf32>
    %236 = arith.divf %234, %235 : vector<8x1xf32>
    %cst_80 = arith.constant 9.99999974E-6 : f32
    %237 = vector.broadcast %cst_80 : f32 to vector<8x1xf32>
    %238 = arith.addf %236, %237 : vector<8x1xf32>
    %239 = math.rsqrt %238 : vector<8x1xf32>
    %240 = vector.broadcast %239 : vector<8x1xf32> to vector<8x64xf32>
    %241 = arith.mulf %231, %240 : vector<8x64xf32>
    %242 = vector.broadcast %224 : vector<1x64xf32> to vector<8x64xf32>
    %243 = arith.mulf %241, %242 : vector<8x64xf32>
    %244 = vector.broadcast %225 : vector<1x64xf32> to vector<8x64xf32>
    %245 = arith.addf %243, %244 : vector<8x64xf32>
    %246 = arith.truncf %245 : vector<8x64xf32> to vector<8x64xbf16>
    %c1_81 = arith.constant 1 : index
    %c1_82 = arith.constant 1 : index
    %c0_83 = arith.constant 0 : index
    %c0_84 = arith.constant 0 : index
    %247 = vector.load %arg3[%c1_81, %c1_82, %c0_83, %c0_84] : memref<2x3x64x64xbf16, #tpu.memory_space<vmem>>, vector<1x1x64x64xbf16>
    %248 = vector.shape_cast %247 : vector<1x1x64x64xbf16> to vector<64x64xbf16>
    %cst_85 = arith.constant dense<0.000000e+00> : vector<8x64xf32>
    %249 = tpu.matmul %246, %248, %cst_85 {dimension_numbers = #tpu.dot_dimension_numbers<[1], [0], [0], [1], [0, 0, 1, 1], [], []>} : vector<8x64xbf16>, vector<64x64xbf16>, vector<8x64xf32> -> vector<8x64xf32>
    %c14 = arith.constant 14 : index
    %c0_86 = arith.constant 0 : index
    %250 = vector.load %arg4[%c14, %c0_86] : memref<18x192xf32, #tpu.memory_space<vmem>>, vector<1x64xf32>
    %251 = vector.broadcast %250 : vector<1x64xf32> to vector<8x64xf32>
    %252 = arith.addf %249, %251 : vector<8x64xf32>
    %cst_87 = arith.constant 0.000000e+00 : f32
    %253 = vector.broadcast %cst_87 : f32 to vector<8x64xf32>
    %254 = arith.maximumf %252, %253 : vector<8x64xf32>
    %255 = arith.truncf %254 : vector<8x64xf32> to vector<8x64xbf16>
    %c1_88 = arith.constant 1 : index
    %c2_89 = arith.constant 2 : index
    %c0_90 = arith.constant 0 : index
    %c0_91 = arith.constant 0 : index
    %256 = vector.load %arg3[%c1_88, %c2_89, %c0_90, %c0_91] : memref<2x3x64x64xbf16, #tpu.memory_space<vmem>>, vector<1x1x64x64xbf16>
    %257 = vector.shape_cast %256 : vector<1x1x64x64xbf16> to vector<64x64xbf16>
    %cst_92 = arith.constant dense<0.000000e+00> : vector<8x64xf32>
    %258 = tpu.matmul %255, %257, %cst_92 {dimension_numbers = #tpu.dot_dimension_numbers<[1], [0], [0], [1], [0, 0, 1, 1], [], []>} : vector<8x64xbf16>, vector<64x64xbf16>, vector<8x64xf32> -> vector<8x64xf32>
    %c15 = arith.constant 15 : index
    %c0_93 = arith.constant 0 : index
    %259 = vector.load %arg4[%c15, %c0_93] : memref<18x192xf32, #tpu.memory_space<vmem>>, vector<1x64xf32>
    %260 = vector.broadcast %259 : vector<1x64xf32> to vector<8x64xf32>
    %261 = arith.addf %258, %260 : vector<8x64xf32>
    %262 = arith.addf %245, %261 : vector<8x64xf32>
    %c16 = arith.constant 16 : index
    %c0_94 = arith.constant 0 : index
    %263 = vector.load %arg4[%c16, %c0_94] : memref<18x192xf32, #tpu.memory_space<vmem>>, vector<1x64xf32>
    %c17 = arith.constant 17 : index
    %c0_95 = arith.constant 0 : index
    %264 = vector.load %arg4[%c17, %c0_95] : memref<18x192xf32, #tpu.memory_space<vmem>>, vector<1x64xf32>
    %cst_96 = arith.constant dense<0.000000e+00> : vector<8xf32>
    %265 = vector.multi_reduction <add>, %262, %cst_96 [1] : vector<8x64xf32> to vector<8xf32>
    %266 = vector.shape_cast %265 : vector<8xf32> to vector<8x1xf32>
    %cst_97 = arith.constant 6.400000e+01 : f32
    %267 = vector.broadcast %cst_97 : f32 to vector<8x1xf32>
    %268 = arith.divf %266, %267 : vector<8x1xf32>
    %269 = vector.broadcast %268 : vector<8x1xf32> to vector<8x64xf32>
    %270 = arith.subf %262, %269 : vector<8x64xf32>
    %271 = arith.mulf %270, %270 : vector<8x64xf32>
    %cst_98 = arith.constant dense<0.000000e+00> : vector<8xf32>
    %272 = vector.multi_reduction <add>, %271, %cst_98 [1] : vector<8x64xf32> to vector<8xf32>
    %273 = vector.shape_cast %272 : vector<8xf32> to vector<8x1xf32>
    %cst_99 = arith.constant 6.400000e+01 : f32
    %274 = vector.broadcast %cst_99 : f32 to vector<8x1xf32>
    %275 = arith.divf %273, %274 : vector<8x1xf32>
    %cst_100 = arith.constant 9.99999974E-6 : f32
    %276 = vector.broadcast %cst_100 : f32 to vector<8x1xf32>
    %277 = arith.addf %275, %276 : vector<8x1xf32>
    %278 = math.rsqrt %277 : vector<8x1xf32>
    %279 = vector.broadcast %278 : vector<8x1xf32> to vector<8x64xf32>
    %280 = arith.mulf %270, %279 : vector<8x64xf32>
    %281 = vector.broadcast %263 : vector<1x64xf32> to vector<8x64xf32>
    %282 = arith.mulf %280, %281 : vector<8x64xf32>
    %283 = vector.broadcast %264 : vector<1x64xf32> to vector<8x64xf32>
    %284 = arith.addf %282, %283 : vector<8x64xf32>
    %c0_101 = arith.constant 0 : index
    %c64 = arith.constant 64 : index
    %285 = vector.load %arg1[%c0_101, %c64] : memref<64x192xbf16, #tpu.memory_space<vmem>>, vector<64x128xbf16>
    %286 = arith.truncf %284 : vector<8x64xf32> to vector<8x64xbf16>
    %cst_102 = arith.constant dense<0.000000e+00> : vector<8x128xf32>
    %287 = tpu.matmul %286, %285, %cst_102 {dimension_numbers = #tpu.dot_dimension_numbers<[1], [0], [0], [1], [0, 0, 1, 1], [], []>} : vector<8x64xbf16>, vector<64x128xbf16>, vector<8x128xf32> -> vector<8x128xf32>
    %c1_103 = arith.constant 1 : index
    %c0_104 = arith.constant 0 : index
    %288 = vector.load %arg4[%c1_103, %c0_104] : memref<18x192xf32, #tpu.memory_space<vmem>>, vector<1x128xf32>
    %289 = vector.broadcast %288 : vector<1x128xf32> to vector<8x128xf32>
    %290 = arith.addf %287, %289 : vector<8x128xf32>
    %c0_105 = arith.constant 0 : index
    %c0_106 = arith.constant 0 : index
    %291 = vector.load %arg5[%c0_105, %c0_106] : memref<8x128xf32, #tpu.memory_space<vmem>>, vector<8x128xf32>
    tpu.vector_store %arg5[%c0_105, %c0_106], %290 {strides = array<i32>} : memref<8x128xf32, #tpu.memory_space<vmem>>, vector<8x128xf32>,
    return
  }
}

</mosaic_0001>

<bundles_post_ra>
// kernel: tpu_custom_call.1
= control target key start
LH: loop header
LB: loop body
LE: loop exit
PB: predicated region body
PF: predicated region fallthrough
CT: control target
= control target key end

     0   :  { %10 = vsyncpa [#allocation3], 0  ;;  %s2383_s0 = inlined_call_operand.hbm [shape: f32[8,16], index: 0, kind: input, shape index: {}]   ;;  %s2384_s1 = inlined_call_operand.hbm [shape: bf16[64,192], index: 1, kind: input, shape index: {}]   ;;  %s2385_s2 = inlined_call_operand.hbm [shape: bf16[2,64,192], index: 2, kind: input, shape index: {}]   ;;  %s2386_s3 = inlined_call_operand.hbm [shape: bf16[2,3,64,64], index: 3, kind: input, shape index: {}]   ;;  %s2387_s4 = inlined_call_operand.hbm [shape: f32[18,192], index: 4, kind: input, shape index: {}]   ;;  %s2388_s5 = inlined_call_operand.hbm [shape: f32[8,128], index: 5, kind: output, shape index: {}]  }
   0x1   :  { %11 = vsyncpa [#allocation6], 0 }
   0x2   :  { %12 = vsyncpa [#allocation9], 0 }
   0x3   :  { %13 = vsyncpa [#allocation4], 0  ;;  %s2062_s18 = smov [#allocation5]   ;;  %s1922_s22 = scalar_lea.hbm %s2384_s1, 1024 }
   0x4   :  { %s29_s19 = sshll.u32 %s2062_s18, 4  ;;  %p1923_p0 = scmp.ne.s32.totalorder %s2384_s1, %s1922_s22  ;;  %s30_s19 = int_to_ptr.vmem [resolvable:$true] %s29_s19 }
   0x5   :  { %p1926_p1 = scmp.lt.u32.totalorder %s1922_s22, %s2384_s1 }
   0x7   :  { %p1928_p2 = pnand %p1926_p1, %p1923_p0 }
   0x9   :  { %1931 = shalt.err (!%p1928_p2)
}
   0xa   :  { %s1932_s27 = scalar_lea.vmem %s30_s19, 1024  ;;  %p1937_p4 = scmp.lt.s32.totalorder %s30_s19, %s30_s19 }
   0xb   :  { %p1933_p3 = scmp.ne.s32.totalorder %s30_s19, %s1932_s27  ;;  %p1938_p5 = scmp.lt.s32.totalorder %s1932_s27, %s1932_s27 }
   0xd   :  { %p1939_p6 = por %p1938_p5, %p1937_p4 }
   0xf   :  { %p1940_p7 = pnand %p1939_p6, %p1933_p3 }
  0x11   :  { %1943 = shalt.err (!%p1940_p7)
}
  0x12   :  { %s2063_s28 = smov 128   ;;  %s2064_s29 = smov 8  }
  0x13   :  { %35 = dma.hbm_to_vmem [thread:$0]  %s2384_s1, 1024, %s30_s19, [#allocation6], %s2063_s28, %s2063_s28, %s2064_s29  }
  0x14   :  { %s2065_s7 = smov [#allocation8]   ;;  %s1944_s11 = scalar_lea.hbm %s2386_s3, 3072 }
  0x15   :  { %s53_s8 = sshll.u32 %s2065_s7, 4  ;;  %p1945_p8 = scmp.ne.s32.totalorder %s2386_s3, %s1944_s11  ;;  %s54_s8 = int_to_ptr.vmem [resolvable:$true] %s53_s8 }
  0x16   :  { %p1948_p9 = scmp.lt.u32.totalorder %s1944_s11, %s2386_s3 }
  0x18   :  { %p1950_p10 = pnand %p1948_p9, %p1945_p8 }
  0x1a   :  { %1953 = shalt.err (!%p1950_p10)
}
  0x1b   :  { %s1954_s16 = scalar_lea.vmem %s54_s8, 3072  ;;  %p1959_p12 = scmp.lt.s32.totalorder %s54_s8, %s54_s8 }
  0x1c   :  { %p1955_p11 = scmp.ne.s32.totalorder %s54_s8, %s1954_s16  ;;  %p1960_p13 = scmp.lt.s32.totalorder %s1954_s16, %s1954_s16 }
  0x1e   :  { %p1961_p0 = por %p1960_p13, %p1959_p12 }
  0x20   :  { %p1962_p1 = pnand %p1961_p0, %p1955_p11 }
  0x22   :  { %1965 = shalt.err (!%p1962_p1)
}
  0x23   :  { %s2066_s1 = smov 64   ;;  %s2067_s17 = smov 4  }
  0x24   :  { %59 = dma.hbm_to_vmem [thread:$0]  %s2386_s3, 3072, %s54_s8, [#allocation9], %s2066_s1, %s2066_s1, %s2067_s17  }
  0x25   :  { %s2068_s20 = smov [#allocation2]   ;;  %s2069_s22 = smov [#allocation7]  }
  0x26   :  { %s20_s21 = sshll.u32 %s2068_s20, 4  ;;  %s41_s23 = sshll.u32 %s2069_s22, 4  ;;  %s21_s21 = int_to_ptr.vmem [resolvable:$true] %s20_s21  ;;  %s2142_s23 = int_to_ptr.vmem [resolvable:$true] %s41_s23 }
  0x27   :  { %s1966_s26 = scalar_lea.hbm %s2383_s0, 128 }
  0x28   :  { %p1967_p2 = scmp.ne.s32.totalorder %s2383_s0, %s1966_s26  ;;  %p1970_p3 = scmp.lt.u32.totalorder %s1966_s26, %s2383_s0 }
  0x2a   :  { %p1972_p4 = pnand %p1970_p3, %p1967_p2 }
  0x2c   :  { %1975 = shalt.err (!%p1972_p4)
}
  0x2d   :  { %s1976_s3 = scalar_lea.vmem %s21_s21, 128  ;;  %p1981_p6 = scmp.lt.s32.totalorder %s21_s21, %s21_s21 }
  0x2e   :  { %p1977_p5 = scmp.ne.s32.totalorder %s21_s21, %s1976_s3  ;;  %p1982_p7 = scmp.lt.s32.totalorder %s1976_s3, %s1976_s3 }
  0x30   :  { %p1983_p8 = por %p1982_p7, %p1981_p6 }
  0x32   :  { %p1984_p9 = pnand %p1983_p8, %p1977_p5 }
  0x34   :  { %1987 = shalt.err (!%p1984_p9)
}
  0x35   :  { %23 = dma.hbm_to_vmem [thread:$0]  %s2383_s0, 128, %s21_s21, [#allocation3]  }
  0x36   :  { %s1988_s12 = scalar_lea.hbm %s2385_s2, 2048 }
  0x37   :  { %p1989_p10 = scmp.ne.s32.totalorder %s2385_s2, %s1988_s12  ;;  %p1992_p11 = scmp.lt.u32.totalorder %s1988_s12, %s2385_s2 }
  0x39   :  { %p1994_p12 = pnand %p1992_p11, %p1989_p10 }
  0x3b   :  { %1997 = shalt.err (!%p1994_p12)
}
  0x3c   :  { %s1998_s17 = scalar_lea.vmem %s2142_s23, 2048  ;;  %p2003_p0 = scmp.lt.s32.totalorder %s2142_s23, %s2142_s23 }
  0x3d   :  { %p1999_p13 = scmp.ne.s32.totalorder %s2142_s23, %s1998_s17  ;;  %p2004_p1 = scmp.lt.s32.totalorder %s1998_s17, %s1998_s17 }
  0x3f   :  { %p2005_p2 = por %p2004_p1, %p2003_p0 }
  0x41   :  { %p2006_p3 = pnand %p2005_p2, %p1999_p13 }
  0x43   :  { %2009 = shalt.err (!%p2006_p3)
}
  0x44   :  { %47 = dma.hbm_to_vmem [thread:$0]  %s2385_s2, 2048, %s2142_s23, [#allocation6], %s2063_s28, %s2063_s28, %s2064_s29  }
  0x45   :  { %s2070_s19 = smov [#allocation10]   ;;  %s2010_s24 = scalar_lea.hbm %s2387_s4, 768 }
  0x46   :  { %s65_s20 = sshll.u32 %s2070_s19, 4  ;;  %p2011_p4 = scmp.ne.s32.totalorder %s2387_s4, %s2010_s24  ;;  %s66_s20 = int_to_ptr.vmem [resolvable:$true] %s65_s20 }
  0x47   :  { %p2014_p5 = scmp.lt.u32.totalorder %s2010_s24, %s2387_s4 }
  0x49   :  { %p2016_p6 = pnand %p2014_p5, %p2011_p4 }
  0x4b   :  { %2019 = shalt.err (!%p2016_p6)
}
  0x4c   :  { %s2020_s6 = scalar_lea.vmem %s66_s20, 768  ;;  %p2025_p8 = scmp.lt.s32.totalorder %s66_s20, %s66_s20 }
  0x4d   :  { %p2021_p7 = scmp.ne.s32.totalorder %s66_s20, %s2020_s6  ;;  %p2026_p9 = scmp.lt.s32.totalorder %s2020_s6, %s2020_s6 }
  0x4f   :  { %p2027_p10 = por %p2026_p9, %p2025_p8 }
  0x51   :  { %p2028_p11 = pnand %p2027_p10, %p2021_p7 }
  0x53   :  { %2031 = shalt.err (!%p2028_p11)
}
  0x54   :  { %s2071_s2 = smov 256   ;;  %s2072_s28 = smov 16  }
  0x55   :  { %71 = dma.hbm_to_vmem [thread:$0]  %s2387_s4, 768, %s66_s20, [#allocation9], %s2071_s2, %s2071_s2, %s2072_s28  }
  0x56   :  { %2054 = dma.done.wait [#allocation3], 128  }
  0x57   :  { %2055 = vsyncadd [#allocation3], 4294967168 }
  0x58   :  { %2056 = dma.done.wait [#allocation6], 3072  }
  0x59   :  { %2057 = vsyncadd [#allocation6], 4294964224 }
  0x5a   :  { %2058 = dma.done.wait [#allocation9], 3840  }
  0x5b   :  { %2059 = vsyncadd [#allocation9], 4294963456  ;;  %v2073_v0 = vmov 0.0   ;;  %vm2074_vm0 = vmmov 0   ;;  %v1821_v1 = vld [vmem:[#allocation5] ss:$8 sps:$4 sm:$0xff]   ;;  %v93_v20 = vlaneseq }
  0x5c   :  { %1674 = vmatprep.subr.bf16.mxu0 %v2073_v0  ;;  %1676 = vmatprep.mubr.msk.bf16.mxu0 %vm2074_vm0, %v2073_v0  ;;  %v201_v2 = vld [vmem:[#allocation2] sm:$0xff]  ;;  %vm210_vm1 = vcmask 130048   ;;  %v1822_v4 = vld [vmem:[#allocation7 + $0x4] ss:$8 sps:$4 sm:$0xff]   ;;  %v1824_v5 = vld [vmem:[#allocation7] ss:$8 sps:$4 sm:$0xff]  }
  0x5d   :  { %1675 = vmatpush3.bf16.msra.mxu0 %v1821_v1  ;;  %v202_v3 = vpack.c.bf16 %v201_v2, %v201_v2  ;;  %v1825_v6 = vld [vmem:[#allocation7 + $0x14] ss:$8 sps:$4 sm:$0xff]   ;;  %320 = vmatprep.subr.bf16.mxu1 %v1822_v4  ;;  %v1827_v7 = vld [vmem:[#allocation7 + $0x10] ss:$8 sps:$4 sm:$0xff]   ;;  %v1828_v8 = vld [vmem:[#allocation7 + $0x24] ss:$8 sps:$4 sm:$0xff]  }
  0x5e   :  { %321 = vmatpush1.bf16.msra.mxu1 %v1824_v5  ;;  %v1830_v9 = vld [vmem:[#allocation7 + $0x20] ss:$8 sps:$4 sm:$0xff]   ;;  %v1831_v10 = vld [vmem:[#allocation7 + $0x34] ss:$8 sps:$4 sm:$0xff]   ;;  %v1833_v11 = vld [vmem:[#allocation7 + $0x30] ss:$8 sps:$4 sm:$0xff]  }
  0x5f   :  { %322 = vmatprep.subr.bf16.mxu1 %v1825_v6  ;;  %v2075_v12 = vmov 0   ;;  %v203_v13 = vld [vmem:[#allocation10] ss:$0 sm:$0xff]  ;;  %vm316_vm2 = vcmask 523264   ;;  %v2199_v21 = vshrl.u32 %v93_v20, 7  ;;  %s2076_s4 = smov 80  }
  0x60   :  { %1677 = vmatmul.mubr.msk.bf16.vlgmr.msra.gmra.mrb[0].mxu0 %vm210_vm1, %v202_v3  ;;  %352 = vmatprep.mubr.bf16.mxu1 %v2075_v12  ;;  %v2202_v23 = vld [vmem:[#allocation10 + $0x2] ss:$8 sm:$0x3]  ;;  %s2077_s7 = smov 112   ;;  %s2078_s3 = smov 96   ;;  %v94_v39 = vand.u32 127, %v93_v20 }
  0x61   :  { %v268_v22 = vsub.s32 0, %v2199_v21  ;;  %v2079_v40 = vmov -1e+30   ;;  %vm450_vm13 = vcmask 261120   ;;  %v272_v57 = vsub.s32 1, %v2199_v21  ;;  %s2080_s8 = smov 32  }
  0x62   :  { %323 = vmatpush1.bf16.msra.mxu1 %v1827_v7  ;;  %vm155_vm3 = vcmp.ge.s32.totalorder %v94_v39, 16  ;;  %vm160_vm4 = vcmp.lt.s32.totalorder %v94_v39, 24  ;;  %vm181_vm5 = vcmp.ge.s32.totalorder %v94_v39, 24  ;;  %vm186_vm6 = vcmp.lt.s32.totalorder %v94_v39, 32  ;;  %s2081_s9 = smov 48  }
  0x63   :  { %324 = vmatprep.subr.bf16.mxu1 %v1828_v8  ;;  %v269_v24 = vrot.slane %v2202_v23, %v268_v22  ;;  %vm163_vm7 = vmand %vm155_vm3, %vm160_vm4  ;;  %vm129_vm8 = vcmp.ge.s32.totalorder %v94_v39, 8  ;;  %vm134_vm9 = vcmp.lt.s32.totalorder %v94_v39, 16  ;;  %vm112_vm10 = vcmp.lt.s32.totalorder %v94_v39, 8 }
  0x64   :  { %vm190_vm11 = vmand %vm181_vm5, %vm186_vm6  ;;  %v2223_v41 = vsel %vm163_vm7, 0.0, %v2079_v40  ;;  %v2225_v42 = vsel %vm112_vm10, 0.0, %v2079_v40  ;;  %v273_v58 = vrot.slane %v2202_v23, %v272_v57  ;;  %vm568_vm14 = vcmask 392192  }
  0x65   :  { %vm136_vm12 = vmand %vm129_vm8, %vm134_vm9  ;;  %v2228_v46 = vsel %vm190_vm11, 0.0, %v2079_v40 }
  0x66   :  { %325 = vmatpush1.bf16.msra.mxu1 %v1830_v9  ;;  %v2230_v47 = vsel %vm136_vm12, 0.0, %v2079_v40 }
  0x67   :  { %326 = vmatprep.subr.bf16.mxu1 %v1831_v10 }
  0x6a   :  { %327 = vmatpush1.bf16.msra.mxu1 %v1833_v11 }
 0x133   :  { %v248_v14 = vpop.f32.mrb[0].mxu0 }
 0x134   :  { %v2194_v15 = vadd.f32 %v248_v14, %v203_v13  ;;  %v1678_v16 = vpop.f32.mrb[1].mxu0 }
 0x135   :  { %v251_v17 = vpop.f32.mrb[2].mxu0 }
 0x136   :  { %v254_v18 = vpack.c.bf16 %v2194_v15, %v2194_v15  ;;  %v1679_v19 = vpop.f32.mrb[3].mxu0 }
 0x138   :  { %1564 = vmatmul.mubr.msk.bf16.vlgmr.msra.gmra.mrb[0].mxu1 %vm316_vm2, %v254_v18 }
 0x20b   :  { %v354_v25 = vpop.f32.mrb[0].mxu1 }
 0x20c   :  { %v355_v26 = vadd.f32 %v354_v25, %v269_v24  ;;  %v2207_v27 = vpop.f32.mrb[1].mxu1 }
 0x20d   :  { %v358_v28 = vpop.f32.mrb[2].mxu1  ;;  %v357_v59 = vadd.f32 %v2207_v27, %v273_v58 }
 0x20e   :  { %v359_v29 = vpop.f32.mrb[3].mxu1  ;;  %368 = vrot.lane.b32.xlu1 %v355_v26, %s2076_s4  ;;  %362 = vrot.lane.b32.xlu0 %v355_v26, %s2077_s7  ;;  %v1834_v28 = vld [vmem:[#allocation8] sm:$0xff]  }
 0x20f   :  { %v1835_v29 = vld [vmem:[#allocation8 + $0x8] sm:$0xff]  }
 0x212   :  { %365 = vrot.lane.b32.xlu0 %v355_v26, %s2078_s3 }
 0x280   :  { %v363_v30 = vpop.permute.xlu0 %362  ;;  %v369_v32 = vpop.permute.xlu1 %368 }
 0x281   :  { %v381_v31 = vpack.c.bf16 %v363_v30, %v355_v26 }
 0x283   :  { %385 = vrot.lane.b32.xlu1 %v381_v31, %s2066_s1  ;;  %1684 = vmatprep.mubr.msk.bf16.mxu0 %vm210_vm1, %v381_v31 }
 0x284   :  { %v366_v33 = vpop.permute.xlu0 %365 }
 0x285   :  { %v382_v34 = vpack.c.bf16 %v369_v32, %v366_v33  ;;  %v1836_v32 = vld [vmem:[#allocation8 + $0x10] sm:$0xff]  }
 0x287   :  { %387 = vrot.lane.b32.xlu0 %v382_v34, %s2066_s1 }
 0x2f5   :  { %v386_v35 = vpop.permute.xlu1 %385 }
 0x2f6   :  { %v396_v36 = vsel %vm210_vm1, %v386_v35, 0  ;;  %1796 = vmatprep.subr.msk.bf16.mxu0 %vm210_vm1, %v386_v35 }
 0x2f7   :  { %1681 = vmatpush3.bf16.xpose.msra.mxu0 %v396_v36 }
 0x2f9   :  { %v388_v37 = vpop.permute.xlu0 %387 }
 0x2fa   :  { %1797 = vmatprep.subr.msk.bf16.mxu0 %vm210_vm1, %v388_v37  ;;  %v399_v38 = vsel %vm210_vm1, %v388_v37, 0 }
 0x2ff   :  { %1683 = vmatpush3.bf16.xpose.msra.mxu0 %v399_v38 }
 0x300   :  { %1696 = vmatprep.subr.bf16.mxu0 %v2073_v0 }
 0x306   :  { %1685 = vmatmul.mubr.msk.bf16.vlgmr.msra.gmra.mrb[4].mxu0 %vm210_vm1, %v382_v34  ;;  %v1837_v34 = vld [vmem:[#allocation8 + $0x18] sm:$0xff]  }
 0x307   :  { %1704 = vmatprep.mubr.msk.bf16.mxu0 %vm2074_vm0, %v2073_v0  ;;  %1697 = vmatpush3.bf16.msra.mxu0 %v1834_v28 }
 0x308   :  { %1698 = vmatprep.subr.bf16.mxu0 %v2073_v0 }
 0x30b   :  { %1699 = vmatpush3.bf16.msra.mxu0 %v1835_v29  ;;  %v1844_v29 = vld [vmem:[#allocation8 + $0x50] sm:$0xff]  }
 0x30c   :  { %1700 = vmatprep.subr.bf16.mxu0 %v2073_v0 }
 0x30f   :  { %1701 = vmatpush3.bf16.msra.mxu0 %v1836_v32 }
 0x310   :  { %1702 = vmatprep.subr.bf16.mxu0 %v2073_v0 }
 0x313   :  { %1703 = vmatpush3.bf16.msra.mxu0 %v1837_v34 }
 0x314   :  { %1720 = vmatprep.subr.bf16.mxu0 %v2073_v0 }
 0x3d9   :  { %v1686_v43 = vpop.f32.mrb[4].mxu0 }
 0x3da   :  { %v444_v44 = vadd.f32 %v1686_v43, %v2223_v41  ;;  %v435_v45 = vpop.f32.mrb[5].mxu0 }
 0x3db   :  { %v436_v48 = vadd.f32 %v435_v45, %v2225_v42  ;;  %v1687_v49 = vpop.f32.mrb[6].mxu0 }
 0x3dc   :  { %v438_v50 = vpop.f32.mrb[7].mxu0  ;;  %v457_v51 = vsel %vm450_vm13, %v444_v44, -inf  ;;  %v447_v52 = vadd.f32 %v1687_v49, %v2228_v46 }
 0x3dd   :  { %v439_v53 = vadd.f32 %v438_v50, %v2230_v47  ;;  %458 = vmax.xlane.f32.xlu0 %v457_v51  ;;  %v451_v54 = vsel %vm450_vm13, %v436_v48, -inf }
 0x3de   :  { %452 = vmax.xlane.f32.xlu1 %v451_v54  ;;  %v460_v56 = vsel %vm450_vm13, %v447_v52, -inf }
 0x3df   :  { %v454_v55 = vsel %vm450_vm13, %v439_v53, -inf }
 0x3e1   :  { %455 = vmax.xlane.f32.xlu0 %v454_v55 }
 0x3e2   :  { %461 = vmax.xlane.f32.xlu1 %v460_v56 }
 0x3f3   :  { %375 = vrot.lane.b32.xlu1 %v357_v59, %s2078_s3 }
 0x3f7   :  { %372 = vrot.lane.b32.xlu0 %v357_v59, %s2077_s7  ;;  %378 = vrot.lane.b32.xlu1 %v357_v59, %s2076_s4 }
 0x46a   :  { %v459_v60 = vpop.xlane.xlu0 %458 }
 0x46b   :  { %v465_v61 = vsub.f32 %v444_v44, %v459_v60  ;;  %v453_v62 = vpop.xlane.xlu1 %452  ;;  %v579_v60 = vld [vmem:[#allocation10 + $0x3] ss:$0 sm:$0xff] }
 0x46c   :  { %v463_v63 = vsub.f32 %v436_v48, %v453_v62 }
 0x46d   :  { %v471_v1 = vmul.f32 1.442695, %v465_v61 }
 0x46e   :  { %v467_v2 = vmul.f32 1.442695, %v463_v63  ;;  %v456_v3 = vpop.xlane.xlu0 %455 }
 0x46f   :  { %1882 = vpow2.f32 %v471_v1  ;;  %v464_v4 = vsub.f32 %v439_v53, %v456_v3  ;;  %v462_v5 = vpop.xlane.xlu1 %461 }
 0x470   :  { %v466_v6 = vsub.f32 %v447_v52, %v462_v5  ;;  %1884 = vpow2.f32 %v467_v2 }
 0x471   :  { %v469_v7 = vmul.f32 1.442695, %v464_v4 }
 0x472   :  { %v473_v8 = vmul.f32 1.442695, %v466_v6  ;;  %v373_v9 = vpop.permute.xlu0 %372 }
 0x473   :  { %1886 = vpow2.f32 %v469_v7  ;;  %v493_v10 = vpack.c.bf16 %v373_v9, %v357_v59  ;;  %v376_v11 = vpop.permute.xlu1 %375 }
 0x474   :  { %1888 = vpow2.f32 %v473_v8 }
 0x475   :  { %1688 = vmatprep.subr.bf16.mxu1 %v493_v10 }
 0x476   :  { %1689 = vmatpush3.bf16.msra.mxu1 %v493_v10  ;;  %v1838_v10 = vld [vmem:[#allocation8 + $0x20] sm:$0xff]  }
 0x477   :  { %v379_v13 = vpop.permute.xlu1 %378 }
 0x478   :  { %v494_v14 = vpack.c.bf16 %v379_v13, %v376_v11  ;;  %v1839_v11 = vld [vmem:[#allocation8 + $0x28] sm:$0xff]   ;;  %v1840_v13 = vld [vmem:[#allocation8 + $0x30] sm:$0xff]  }
 0x479   :  { %v1883_v16 = vpop.eup %1882 }
 0x47a   :  { %1690 = vmatprep.subr.bf16.mxu1 %v494_v14  ;;  %v481_v17 = vsel %vm450_vm13, %v1883_v16, 0.0  ;;  %v1885_v18 = vpop.eup %1884 }
 0x47b   :  { %482 = vadd.xlane.f32.xlu1 %v481_v17  ;;  %1691 = vmatpush3.bf16.msra.mxu1 %v494_v14  ;;  %v475_v27 = vsel %vm450_vm13, %v1885_v18, 0.0  ;;  %v1842_v14 = vld [vmem:[#allocation8 + $0x40] sm:$0xff]  }
 0x47c   :  { %1708 = vmatprep.subr.bf16.mxu1 %v2073_v0 }
 0x47d   :  { %v1887_v19 = vpop.eup %1886 }
 0x47e   :  { %v1889_v20 = vpop.eup %1888  ;;  %v478_v23 = vsel %vm450_vm13, %v1887_v19, 0.0  ;;  %v491_v24 = vpack.c.bf16 %v1887_v19, %v1885_v18 }
 0x47f   :  { %479 = vadd.xlane.f32.xlu0 %v478_v23  ;;  %v492_v25 = vpack.c.bf16 %v1889_v20, %v1883_v16  ;;  %v484_v26 = vsel %vm450_vm13, %v1889_v20, 0.0  ;;  %v1843_v16 = vld [vmem:[#allocation8 + $0x48] sm:$0xff]   ;;  %v648_v23 = vld [vmem:[#allocation10 + $0x4] ss:$0 sm:$0xff] }
 0x480   :  { %1692 = vmatprep.mubr.msk.bf16.mxu1 %vm450_vm13, %v491_v24 }
 0x481   :  { %1693 = vmatmul.mubr.msk.bf16.vlgmr.msra.gmra.mrb[4].mxu1 %vm450_vm13, %v492_v25  ;;  %v649_v25 = vld [vmem:[#allocation10 + $0x5] ss:$0 sm:$0xff] }
 0x482   :  { %1716 = vmatprep.mubr.msk.bf16.mxu1 %vm2074_vm0, %v2073_v0  ;;  %1709 = vmatpush3.bf16.msra.mxu1 %v1838_v10 }
 0x483   :  { %485 = vadd.xlane.f32.xlu0 %v484_v26  ;;  %1710 = vmatprep.subr.bf16.mxu1 %v2073_v0 }
 0x486   :  { %1711 = vmatpush3.bf16.msra.mxu1 %v1839_v11  ;;  %v852_v11 = vld [vmem:[#allocation10 + $0x12] ss:$8 sm:$0x3] }
 0x487   :  { %476 = vadd.xlane.f32.xlu0 %v475_v27  ;;  %1712 = vmatprep.subr.bf16.mxu1 %v2073_v0 }
 0x48a   :  { %1713 = vmatpush3.bf16.msra.mxu1 %v1840_v13  ;;  %v857_v13 = vrot.slane %v852_v11, %v268_v22  ;;  %v861_v22 = vrot.slane %v852_v11, %v272_v57 }
 0x48b   :  { %1714 = vmatprep.subr.bf16.mxu1 %v2073_v0 }
 0x508   :  { %v483_v30 = vpop.xlane.xlu1 %482 }
 0x509   :  { %1890 = vrcp.f32 %v483_v30  ;;  %v1845_v30 = vld [vmem:[#allocation8 + $0x58] sm:$0xff]  }
 0x50c   :  { %v480_v31 = vpop.xlane.xlu0 %479 }
 0x50d   :  { %1892 = vrcp.f32 %v480_v31  ;;  %v676_v31 = vld [vmem:[#allocation10 + $0x6] ss:$0 sm:$0xff] }
 0x510   :  { %v486_v33 = vpop.xlane.xlu0 %485 }
 0x511   :  { %1894 = vrcp.f32 %v486_v33 }
 0x513   :  { %v1891_v35 = vpop.eup %1890 }
 0x514   :  { %v477_v49 = vpop.xlane.xlu0 %476 }
 0x515   :  { %1896 = vrcp.f32 %v477_v49 }
 0x517   :  { %v1893_v40 = vpop.eup %1892 }
 0x51b   :  { %v1895_v45 = vpop.eup %1894 }
 0x51f   :  { %v1897_v50 = vpop.eup %1896 }
 0x554   :  { %v1694_v36 = vpop.f32.mrb[4].mxu1 }
 0x555   :  { %v552_v37 = vmul.f32 %v1891_v35, %v1694_v36  ;;  %v535_v38 = vpop.f32.mrb[5].mxu1 }
 0x556   :  { %v1695_v39 = vpop.f32.mrb[6].mxu1  ;;  %v550_v51 = vmul.f32 %v1897_v50, %v535_v38 }
 0x557   :  { %v538_v43 = vpop.f32.mrb[7].mxu1  ;;  %559 = vrot.lane.b32.xlu0 %v552_v37, %s2080_s8  ;;  %v553_v48 = vmul.f32 %v1895_v45, %v1695_v39  ;;  %v755_v39 = vld [vmem:[#allocation10 + $0x7] ss:$0 sm:$0xff] }
 0x558   :  { %v551_v44 = vmul.f32 %v1893_v40, %v538_v43 }
 0x55a   :  { %555 = vrot.lane.b32.xlu1 %v551_v44, %s2072_s28 }
 0x55e   :  { %563 = vrot.lane.b32.xlu1 %v553_v48, %s2081_s9 }
 0x5c9   :  { %v560_v54 = vpop.permute.xlu0 %559 }
 0x5cc   :  { %v556_v52 = vpop.permute.xlu1 %555 }
 0x5cd   :  { %v566_v53 = vsel %vm210_vm1, %v550_v51, %v556_v52 }
 0x5ce   :  { %v567_v55 = vsel %vm450_vm13, %v566_v53, %v560_v54 }
 0x5d0   :  { %v564_v56 = vpop.permute.xlu1 %563 }
 0x5d1   :  { %v569_v58 = vsel %vm568_vm14, %v567_v55, %v564_v56  ;;  %v1848_v55 = vld [vmem:[#allocation7 + $0x44] ss:$8 sps:$4 sm:$0xff]   ;;  %v1846_v56 = vld [vmem:[#allocation7 + $0x40] ss:$8 sps:$4 sm:$0xff]  }
 0x5d2   :  { %v570_v59 = vpack.c.bf16 %v569_v58, %v569_v58  ;;  %v1851_v58 = vld [vmem:[#allocation7 + $0x54] ss:$8 sps:$4 sm:$0xff]  }
 0x5d4   :  { %1705 = vmatmul.mubr.msk.bf16.vlgmr.msra.gmra.mrb[8].mxu0 %vm316_vm2, %v570_v59  ;;  %v1849_v59 = vld [vmem:[#allocation7 + $0x50] ss:$8 sps:$4 sm:$0xff]  }
 0x5d5   :  { %1728 = vmatprep.mubr.msk.bf16.mxu0 %vm2074_vm0, %v2073_v0  ;;  %1721 = vmatpush3.bf16.msra.mxu0 %v1842_v14 }
 0x5d6   :  { %1722 = vmatprep.subr.bf16.mxu0 %v2073_v0 }
 0x5d9   :  { %1723 = vmatpush3.bf16.msra.mxu0 %v1843_v16 }
 0x5da   :  { %1724 = vmatprep.subr.bf16.mxu0 %v2073_v0 }
 0x5dd   :  { %1725 = vmatpush3.bf16.msra.mxu0 %v1844_v29 }
 0x5de   :  { %1726 = vmatprep.subr.bf16.mxu0 %v2073_v0 }
 0x5e1   :  { %1727 = vmatpush3.bf16.msra.mxu0 %v1845_v30 }
 0x6a7   :  { %v641_v61 = vpop.f32.mrb[8].mxu0 }
 0x6a8   :  { %v642_v62 = vadd.f32 %v641_v61, %v579_v60  ;;  %v1706_v63 = vpop.f32.mrb[9].mxu0  ;;  %v1854_v60 = vld [vmem:[#allocation7 + $0x64] ss:$8 sps:$4 sm:$0xff]   ;;  %v1852_v61 = vld [vmem:[#allocation7 + $0x60] ss:$8 sps:$4 sm:$0xff]  }
 0x6a9   :  { %v644_v1 = vpop.f32.mrb[10].mxu0  ;;  %v1857_v63 = vld [vmem:[#allocation7 + $0x74] ss:$8 sps:$4 sm:$0xff]  }
 0x6aa   :  { %v1707_v2 = vpop.f32.mrb[11].mxu0  ;;  %v647_v3 = vadd.f32 %v642_v62, %v2194_v15  ;;  %v1841_v15 = vld [vmem:[#allocation8 + $0x38] sm:$0xff]  }
 0x6ab   :  { %1715 = vmatpush3.bf16.msra.mxu1 %v1841_v15  ;;  %v1855_v62 = vld [vmem:[#allocation7 + $0x70] ss:$8 sps:$4 sm:$0xff]  }
 0x6ac   :  { %v650_v4 = vsel %vm316_vm2, %v647_v3, 0.0  ;;  %907 = vmatprep.subr.bf16.mxu1 %v1848_v55 }
 0x6ad   :  { %651 = vadd.xlane.f32.xlu1 %v650_v4 }
 0x73a   :  { %v652_v5 = vpop.xlane.xlu1 %651 }
 0x73b   :  { %v654_v6 = vmul.f32 0.015625, %v652_v5  ;;  %v824_v5 = vld [vmem:[#allocation10 + $0x10] ss:$0 sm:$0xff] }
 0x73d   :  { %v655_v7 = vsub.f32 %v647_v3, %v654_v6 }
 0x73f   :  { %v656_v8 = vmul.f32 %v655_v7, %v655_v7 }
 0x741   :  { %v657_v9 = vsel %vm316_vm2, %v656_v8, 0.0 }
 0x742   :  { %658 = vadd.xlane.f32.xlu0 %v657_v9 }
 0x7cf   :  { %v659_v17 = vpop.xlane.xlu0 %658 }
 0x7d0   :  { %v660_v18 = vmul.f32 0.015625, %v659_v17 }
 0x7d2   :  { %v661_v19 = vadd.f32 1e-05, %v660_v18 }
 0x7d4   :  { %1898 = vrsqrt.f32 %v661_v19 }
 0x7de   :  { %v1899_v20 = vpop.eup %1898 }
 0x7df   :  { %v663_v24 = vmul.f32 %v1899_v20, %v655_v7  ;;  %v825_v7 = vld [vmem:[#allocation10 + $0x11] ss:$0 sm:$0xff] }
 0x7e1   :  { %v664_v26 = vmul.f32 %v663_v24, %v648_v23 }
 0x7e3   :  { %v665_v27 = vadd.f32 %v664_v26, %v649_v25 }
 0x7e5   :  { %v666_v28 = vpack.c.bf16 %v665_v27, %v665_v27 }
 0x7e7   :  { %1717 = vmatmul.mubr.msk.bf16.vlgmr.msra.gmra.mrb[8].mxu1 %vm316_vm2, %v666_v28 }
 0x7e8   :  { %939 = vmatprep.mubr.bf16.mxu1 %v2075_v12  ;;  %908 = vmatpush1.bf16.msra.mxu1 %v1846_v56 }
 0x7e9   :  { %909 = vmatprep.subr.bf16.mxu1 %v1851_v58 }
 0x7ec   :  { %910 = vmatpush1.bf16.msra.mxu1 %v1849_v59 }
 0x7ed   :  { %911 = vmatprep.subr.bf16.mxu1 %v1854_v60 }
 0x7f0   :  { %912 = vmatpush1.bf16.msra.mxu1 %v1852_v61 }
 0x7f1   :  { %913 = vmatprep.subr.bf16.mxu1 %v1857_v63 }
 0x7f4   :  { %914 = vmatpush1.bf16.msra.mxu1 %v1855_v62 }
 0x8ba   :  { %v738_v32 = vpop.f32.mrb[8].mxu1 }
 0x8bb   :  { %v739_v33 = vadd.f32 %v738_v32, %v676_v31  ;;  %v1718_v34 = vpop.f32.mrb[9].mxu1 }
 0x8bc   :  { %v741_v35 = vpop.f32.mrb[10].mxu1 }
 0x8bd   :  { %v744_v36 = vmax.f32 %v739_v33, 0.0  ;;  %v1719_v37 = vpop.f32.mrb[11].mxu1 }
 0x8bf   :  { %v745_v38 = vpack.c.bf16 %v744_v36, %v744_v36 }
 0x8c1   :  { %1729 = vmatmul.mubr.msk.bf16.vlgmr.msra.gmra.mrb[12].mxu0 %vm316_vm2, %v745_v38 }
 0x994   :  { %v817_v40 = vpop.f32.mrb[12].mxu0 }
 0x995   :  { %v818_v43 = vadd.f32 %v817_v40, %v755_v39  ;;  %v1730_v12 = vpop.f32.mrb[13].mxu0 }
 0x996   :  { %v820_v44 = vpop.f32.mrb[14].mxu0 }
 0x997   :  { %v1731_v45 = vpop.f32.mrb[15].mxu0  ;;  %v823_v48 = vadd.f32 %v818_v43, %v665_v27 }
 0x999   :  { %v826_v49 = vsel %vm316_vm2, %v823_v48, 0.0 }
 0x99a   :  { %827 = vadd.xlane.f32.xlu0 %v826_v49 }
 0xa27   :  { %v828_v50 = vpop.xlane.xlu0 %827 }
 0xa28   :  { %v829_v51 = vmul.f32 0.015625, %v828_v50 }
 0xa2a   :  { %v830_v52 = vsub.f32 %v823_v48, %v829_v51 }
 0xa2c   :  { %v831_v53 = vmul.f32 %v830_v52, %v830_v52 }
 0xa2e   :  { %v832_v54 = vsel %vm316_vm2, %v831_v53, 0.0 }
 0xa2f   :  { %833 = vadd.xlane.f32.xlu1 %v832_v54 }
 0xabc   :  { %v834_v1 = vpop.xlane.xlu1 %833 }
 0xabd   :  { %v835_v2 = vmul.f32 0.015625, %v834_v1 }
 0xabf   :  { %v836_v3 = vadd.f32 1e-05, %v835_v2 }
 0xac1   :  { %1900 = vrsqrt.f32 %v836_v3 }
 0xacb   :  { %v1901_v4 = vpop.eup %1900 }
 0xacc   :  { %v838_v6 = vmul.f32 %v1901_v4, %v830_v52 }
 0xace   :  { %v839_v8 = vmul.f32 %v838_v6, %v824_v5  ;;  %v1858_v5 = vld [vmem:[#allocation8 + $0x60] sm:$0xff]   ;;  %v1859_v6 = vld [vmem:[#allocation8 + $0x68] sm:$0xff]  }
 0xad0   :  { %v2283_v9 = vadd.f32 %v839_v8, %v825_v7  ;;  %v1860_v8 = vld [vmem:[#allocation8 + $0x70] sm:$0xff]  }
 0xad2   :  { %v841_v10 = vpack.c.bf16 %v2283_v9, %v2283_v9 }
 0xad4   :  { %1592 = vmatmul.mubr.msk.bf16.vlgmr.msra.gmra.mrb[12].mxu1 %vm316_vm2, %v841_v10 }
 0xba7   :  { %v941_v15 = vpop.f32.mrb[12].mxu1 }
 0xba8   :  { %v942_v14 = vadd.f32 %v941_v15, %v857_v13  ;;  %v943_v16 = vpop.f32.mrb[13].mxu1  ;;  %v1861_v13 = vld [vmem:[#allocation8 + $0x78] sm:$0xff]  }
 0xba9   :  { %v945_v17 = vpop.f32.mrb[14].mxu1  ;;  %v944_v26 = vadd.f32 %v943_v16, %v861_v22 }
 0xbaa   :  { %v946_v18 = vpop.f32.mrb[15].mxu1  ;;  %952 = vrot.lane.b32.xlu1 %v942_v14, %s2078_s3  ;;  %949 = vrot.lane.b32.xlu0 %v942_v14, %s2077_s7 }
 0xbae   :  { %955 = vrot.lane.b32.xlu1 %v942_v14, %s2076_s4 }
 0xc1c   :  { %v953_v19 = vpop.permute.xlu1 %952  ;;  %v950_v20 = vpop.permute.xlu0 %949 }
 0xc1d   :  { %v968_v23 = vpack.c.bf16 %v950_v20, %v942_v14 }
 0xc1f   :  { %972 = vrot.lane.b32.xlu0 %v968_v23, %s2066_s1  ;;  %1736 = vmatprep.mubr.msk.bf16.mxu0 %vm210_vm1, %v968_v23 }
 0xc20   :  { %v956_v24 = vpop.permute.xlu1 %955 }
 0xc21   :  { %v969_v25 = vpack.c.bf16 %v956_v24, %v953_v19 }
 0xc23   :  { %974 = vrot.lane.b32.xlu1 %v969_v25, %s2066_s1 }
 0xc27   :  { %959 = vrot.lane.b32.xlu1 %v944_v26, %s2077_s7 }
 0xc91   :  { %v973_v27 = vpop.permute.xlu0 %972 }
 0xc92   :  { %v983_v28 = vsel %vm210_vm1, %v973_v27, 0  ;;  %1798 = vmatprep.subr.msk.bf16.mxu0 %vm210_vm1, %v973_v27 }
 0xc93   :  { %1733 = vmatpush3.bf16.xpose.msra.mxu0 %v983_v28 }
 0xc95   :  { %v975_v29 = vpop.permute.xlu1 %974 }
 0xc96   :  { %1799 = vmatprep.subr.msk.bf16.mxu0 %vm210_vm1, %v975_v29  ;;  %v986_v31 = vsel %vm210_vm1, %v975_v29, 0 }
 0xc99   :  { %v960_v30 = vpop.permute.xlu1 %959 }
 0xc9a   :  { %v1079_v21 = vpack.c.bf16 %v960_v30, %v944_v26 }
 0xc9b   :  { %1735 = vmatpush3.bf16.xpose.msra.mxu0 %v986_v31 }
 0xc9c   :  { %1740 = vmatprep.subr.bf16.mxu1 %v1079_v21  ;;  %1760 = vmatprep.subr.bf16.mxu0 %v2073_v0 }
 0xc9d   :  { %1741 = vmatpush3.bf16.msra.mxu1 %v1079_v21 }
 0xca2   :  { %1737 = vmatmul.mubr.msk.bf16.vlgmr.msra.gmra.mrb[16].mxu0 %vm210_vm1, %v969_v25 }
 0xca3   :  { %1768 = vmatprep.mubr.msk.bf16.mxu0 %vm2074_vm0, %v2073_v0 }
 0xd75   :  { %v1738_v57 = vpop.f32.mrb[16].mxu0 }
 0xd76   :  { %v1031_v32 = vadd.f32 %v1738_v57, %v2223_v41  ;;  %v1022_v33 = vpop.f32.mrb[17].mxu0 }
 0xd77   :  { %v1739_v34 = vpop.f32.mrb[18].mxu0  ;;  %v1023_v35 = vadd.f32 %v1022_v33, %v2225_v42  ;;  %v1165_v33 = vld [vmem:[#allocation10 + $0x13] ss:$0 sm:$0xff] }
 0xd78   :  { %v1025_v36 = vpop.f32.mrb[19].mxu0  ;;  %v1043_v37 = vsel %vm450_vm13, %v1031_v32, -inf  ;;  %v1034_v40 = vadd.f32 %v1739_v34, %v2228_v46 }
 0xd79   :  { %v1026_v38 = vadd.f32 %v1025_v36, %v2230_v47  ;;  %1044 = vmax.xlane.f32.xlu0 %v1043_v37  ;;  %v1037_v43 = vsel %vm450_vm13, %v1023_v35, -inf }
 0xd7a   :  { %v1046_v41 = vsel %vm450_vm13, %v1034_v40, -inf }
 0xd7b   :  { %v1040_v39 = vsel %vm450_vm13, %v1026_v38, -inf }
 0xd7c   :  { %1041 = vmax.xlane.f32.xlu1 %v1040_v39 }
 0xd7d   :  { %1038 = vmax.xlane.f32.xlu0 %v1037_v43 }
 0xd81   :  { %1047 = vmax.xlane.f32.xlu0 %v1046_v41 }
 0xd8d   :  { %965 = vrot.lane.b32.xlu1 %v944_v26, %s2076_s4 }
 0xd97   :  { %962 = vrot.lane.b32.xlu0 %v944_v26, %s2078_s3 }
 0xe06   :  { %v1045_v42 = vpop.xlane.xlu0 %1044 }
 0xe07   :  { %v1051_v12 = vsub.f32 %v1031_v32, %v1045_v42 }
 0xe09   :  { %v1057_v44 = vmul.f32 1.442695, %v1051_v12  ;;  %v1042_v47 = vpop.xlane.xlu1 %1041 }
 0xe0a   :  { %v1050_v45 = vsub.f32 %v1026_v38, %v1042_v47  ;;  %v1039_v48 = vpop.xlane.xlu0 %1038  ;;  %v1862_v47 = vld [vmem:[#allocation8 + $0x80] sm:$0xff]  }
 0xe0b   :  { %1902 = vpow2.f32 %v1057_v44  ;;  %v1049_v49 = vsub.f32 %v1023_v35, %v1039_v48  ;;  %1761 = vmatpush3.bf16.msra.mxu0 %v1862_v47  ;;  %v1864_v48 = vld [vmem:[#allocation8 + $0x90] sm:$0xff]   ;;  %v1409_v47 = vld [vmem:[#allocation10 + $0x20] ss:$0 sm:$0xff] }
 0xe0c   :  { %v1055_v46 = vmul.f32 1.442695, %v1050_v45  ;;  %1762 = vmatprep.subr.bf16.mxu0 %v2073_v0  ;;  %v1863_v45 = vld [vmem:[#allocation8 + $0x88] sm:$0xff]  }
 0xe0d   :  { %v1053_v50 = vmul.f32 1.442695, %v1049_v49  ;;  %v966_v54 = vpop.permute.xlu1 %965  ;;  %v1866_v49 = vld [vmem:[#allocation8 + $0xa0] sm:$0xff]  }
 0xe0e   :  { %1904 = vpow2.f32 %v1055_v46  ;;  %v1048_v51 = vpop.xlane.xlu0 %1047  ;;  %v1867_v46 = vld [vmem:[#allocation8 + $0xa8] sm:$0xff]  }
 0xe0f   :  { %1906 = vpow2.f32 %v1053_v50  ;;  %v1052_v52 = vsub.f32 %v1034_v40, %v1048_v51  ;;  %1763 = vmatpush3.bf16.msra.mxu0 %v1863_v45 }
 0xe10   :  { %1764 = vmatprep.subr.bf16.mxu0 %v2073_v0 }
 0xe11   :  { %v1059_v53 = vmul.f32 1.442695, %v1052_v52 }
 0xe12   :  { %v963_v55 = vpop.permute.xlu0 %962 }
 0xe13   :  { %1908 = vpow2.f32 %v1059_v53  ;;  %v1080_v56 = vpack.c.bf16 %v966_v54, %v963_v55  ;;  %1765 = vmatpush3.bf16.msra.mxu0 %v1864_v48  ;;  %v1234_v54 = vld [vmem:[#allocation10 + $0x14] ss:$0 sm:$0xff]  ;;  %v1410_v48 = vld [vmem:[#allocation10 + $0x21] ss:$0 sm:$0xff] }
 0xe14   :  { %1766 = vmatprep.subr.bf16.mxu0 %v2073_v0 }
 0xe15   :  { %v1903_v58 = vpop.eup %1902  ;;  %1742 = vmatprep.subr.bf16.mxu1 %v1080_v56 }
 0xe16   :  { %1743 = vmatpush3.bf16.msra.mxu1 %v1080_v56  ;;  %v1067_v59 = vsel %vm450_vm13, %v1903_v58, 0.0  ;;  %v1235_v56 = vld [vmem:[#allocation10 + $0x15] ss:$0 sm:$0xff] }
 0xe17   :  { %1068 = vadd.xlane.f32.xlu0 %v1067_v59  ;;  %1748 = vmatprep.subr.bf16.mxu1 %v2073_v0 }
 0xe18   :  { %v1905_v60 = vpop.eup %1904 }
 0xe19   :  { %v1907_v61 = vpop.eup %1906  ;;  %v1064_v62 = vsel %vm450_vm13, %v1905_v60, 0.0 }
 0xe1a   :  { %1065 = vadd.xlane.f32.xlu1 %v1064_v62  ;;  %v1077_v63 = vpack.c.bf16 %v1905_v60, %v1907_v61  ;;  %v1061_v2 = vsel %vm450_vm13, %v1907_v61, 0.0  ;;  %v1868_v61 = vld [vmem:[#allocation8 + $0xb0] sm:$0xff]   ;;  %v1869_v62 = vld [vmem:[#allocation8 + $0xb8] sm:$0xff]  }
 0xe1c   :  { %1744 = vmatprep.mubr.msk.bf16.mxu1 %vm450_vm13, %v1077_v63  ;;  %v1261_v63 = vld [vmem:[#allocation10 + $0x16] ss:$0 sm:$0xff] }
 0xe1d   :  { %v1909_v1 = vpop.eup %1908 }
 0xe1e   :  { %1062 = vadd.xlane.f32.xlu1 %v1061_v2  ;;  %v1070_v3 = vsel %vm450_vm13, %v1909_v1, 0.0  ;;  %v1078_v4 = vpack.c.bf16 %v1909_v1, %v1903_v58 }
 0xe1f   :  { %1071 = vadd.xlane.f32.xlu0 %v1070_v3 }
 0xe20   :  { %1745 = vmatmul.mubr.msk.bf16.vlgmr.msra.gmra.mrb[16].mxu1 %vm450_vm13, %v1078_v4 }
 0xe21   :  { %1756 = vmatprep.mubr.msk.bf16.mxu1 %vm2074_vm0, %v2073_v0  ;;  %1749 = vmatpush3.bf16.msra.mxu1 %v1858_v5 }
 0xe22   :  { %1750 = vmatprep.subr.bf16.mxu1 %v2073_v0 }
 0xe25   :  { %1751 = vmatpush3.bf16.msra.mxu1 %v1859_v6 }
 0xe26   :  { %1752 = vmatprep.subr.bf16.mxu1 %v2073_v0 }
 0xe29   :  { %1753 = vmatpush3.bf16.msra.mxu1 %v1860_v8  ;;  %v1870_v8 = vld [vmem:[#allocation5] ss:$8 sps:$4 sm:$0xff]  }
 0xe2a   :  { %1754 = vmatprep.subr.bf16.mxu1 %v2073_v0 }
 0xe2d   :  { %1755 = vmatpush3.bf16.msra.mxu1 %v1861_v13 }
 0xe2e   :  { %1772 = vmatprep.subr.bf16.mxu1 %v2073_v0 }
 0xea4   :  { %v1069_v7 = vpop.xlane.xlu0 %1068 }
 0xea5   :  { %1910 = vrcp.f32 %v1069_v7 }
 0xea7   :  { %v1066_v10 = vpop.xlane.xlu1 %1065 }
 0xea8   :  { %1912 = vrcp.f32 %v1066_v10  ;;  %v1340_v10 = vld [vmem:[#allocation10 + $0x17] ss:$0 sm:$0xff] }
 0xeab   :  { %v1063_v25 = vpop.xlane.xlu1 %1062 }
 0xeac   :  { %v1072_v11 = vpop.xlane.xlu0 %1071 }
 0xead   :  { %1914 = vrcp.f32 %v1072_v11 }
 0xeae   :  { %1916 = vrcp.f32 %v1063_v25 }
 0xeaf   :  { %v1911_v15 = vpop.eup %1910 }
 0xeb2   :  { %v1913_v19 = vpop.eup %1912 }
 0xeb7   :  { %v1915_v23 = vpop.eup %1914 }
 0xeb8   :  { %v1917_v27 = vpop.eup %1916 }
 0xef3   :  { %v1746_v14 = vpop.f32.mrb[16].mxu1 }
 0xef4   :  { %v1138_v16 = vmul.f32 %v1911_v15, %v1746_v14  ;;  %v1121_v17 = vpop.f32.mrb[17].mxu1 }
 0xef5   :  { %v1747_v18 = vpop.f32.mrb[18].mxu1  ;;  %v1136_v28 = vmul.f32 %v1917_v27, %v1121_v17 }
 0xef6   :  { %v1124_v20 = vpop.f32.mrb[19].mxu1  ;;  %1145 = vrot.lane.b32.xlu1 %v1138_v16, %s2080_s8  ;;  %v1139_v22 = vmul.f32 %v1915_v23, %v1747_v18  ;;  %v1875_v23 = vld [vmem:[#allocation5 + $0x14] ss:$8 sps:$4 sm:$0xff]  }
 0xef7   :  { %v1137_v24 = vmul.f32 %v1913_v19, %v1124_v20  ;;  %v1872_v19 = vld [vmem:[#allocation5 + $0x4] ss:$8 sps:$4 sm:$0xff]   ;;  %v1873_v20 = vld [vmem:[#allocation5 + $0x10] ss:$8 sps:$4 sm:$0xff]  }
 0xef9   :  { %1141 = vrot.lane.b32.xlu0 %v1137_v24, %s2072_s28  ;;  %v1876_v24 = vld [vmem:[#allocation5 + $0x24] ss:$8 sps:$4 sm:$0xff]  }
 0xefa   :  { %1149 = vrot.lane.b32.xlu1 %v1139_v22, %s2081_s9  ;;  %v1879_v22 = vld [vmem:[#allocation5 + $0x34] ss:$8 sps:$4 sm:$0xff]  }
 0xf68   :  { %v1146_v26 = vpop.permute.xlu1 %1145 }
 0xf6b   :  { %v1142_v29 = vpop.permute.xlu0 %1141 }
 0xf6c   :  { %v1152_v30 = vsel %vm210_vm1, %v1136_v28, %v1142_v29  ;;  %v1150_v31 = vpop.permute.xlu1 %1149 }
 0xf6d   :  { %v1153_v21 = vsel %vm450_vm13, %v1152_v30, %v1146_v26 }
 0xf6e   :  { %v1154_v57 = vsel %vm568_vm14, %v1153_v21, %v1150_v31 }
 0xf6f   :  { %v1155_v32 = vpack.c.bf16 %v1154_v57, %v1154_v57 }
 0xf71   :  { %1757 = vmatmul.mubr.msk.bf16.vlgmr.msra.gmra.mrb[20].mxu1 %vm316_vm2, %v1155_v32  ;;  %v1878_v32 = vld [vmem:[#allocation5 + $0x20] ss:$8 sps:$4 sm:$0xff]  }
 0xf72   :  { %1780 = vmatprep.mubr.msk.bf16.mxu1 %vm2074_vm0, %v2073_v0  ;;  %1773 = vmatpush3.bf16.msra.mxu1 %v1866_v49 }
 0xf73   :  { %1774 = vmatprep.subr.bf16.mxu1 %v2073_v0 }
 0xf76   :  { %1775 = vmatpush3.bf16.msra.mxu1 %v1867_v46 }
 0xf77   :  { %1776 = vmatprep.subr.bf16.mxu1 %v2073_v0 }
 0xf7a   :  { %1777 = vmatpush3.bf16.msra.mxu1 %v1868_v61 }
 0xf7b   :  { %1778 = vmatprep.subr.bf16.mxu1 %v2073_v0 }
 0xf7e   :  { %1779 = vmatpush3.bf16.msra.mxu1 %v1869_v62 }
0x1044   :  { %v1227_v34 = vpop.f32.mrb[20].mxu1 }
0x1045   :  { %v1228_v35 = vadd.f32 %v1227_v34, %v1165_v33  ;;  %v1758_v36 = vpop.f32.mrb[21].mxu1 }
0x1046   :  { %v1230_v37 = vpop.f32.mrb[22].mxu1 }
0x1047   :  { %v1759_v38 = vpop.f32.mrb[23].mxu1  ;;  %v1233_v39 = vadd.f32 %v1228_v35, %v2283_v9  ;;  %v1865_v9 = vld [vmem:[#allocation8 + $0x98] sm:$0xff]  }
0x1048   :  { %1767 = vmatpush3.bf16.msra.mxu0 %v1865_v9  ;;  %v1881_v35 = vld [vmem:[#allocation5 + $0x30] ss:$8 sps:$4 sm:$0xff]  }
0x1049   :  { %v1236_v40 = vsel %vm316_vm2, %v1233_v39, 0.0  ;;  %1784 = vmatprep.subr.bf16.mxu0 %v2073_v0 }
0x104a   :  { %1237 = vadd.xlane.f32.xlu0 %v1236_v40 }
0x10d7   :  { %v1238_v43 = vpop.xlane.xlu0 %1237 }
0x10d8   :  { %v1239_v41 = vmul.f32 0.015625, %v1238_v43 }
0x10da   :  { %v1240_v42 = vsub.f32 %v1233_v39, %v1239_v41 }
0x10dc   :  { %v1241_v12 = vmul.f32 %v1240_v42, %v1240_v42 }
0x10de   :  { %v1242_v44 = vsel %vm316_vm2, %v1241_v12, 0.0 }
0x10df   :  { %1243 = vadd.xlane.f32.xlu1 %v1242_v44 }
0x10f0   :  { %1468 = vrot.lane.b32.xlu1 %v1870_v8, %s2066_s1 }
0x10f4   :  { %1472 = vrot.lane.b32.xlu1 %v1873_v20, %s2066_s1 }
0x10f8   :  { %1474 = vrot.lane.b32.xlu1 %v1875_v23, %s2066_s1 }
0x10fc   :  { %1478 = vrot.lane.b32.xlu1 %v1876_v24, %s2066_s1 }
0x1100   :  { %1482 = vrot.lane.b32.xlu1 %v1879_v22, %s2066_s1 }
0x116c   :  { %v1244_v50 = vpop.xlane.xlu1 %1243 }
0x116d   :  { %v1245_v51 = vmul.f32 0.015625, %v1244_v50  ;;  %v1435_v50 = vld [vmem:[#allocation10 + $0x1] ss:$0 sm:$0xff] }
0x116f   :  { %v1246_v52 = vadd.f32 1e-05, %v1245_v51 }
0x1170   :  { %v1469_v27 = vpop.permute.xlu1 %1468 }
0x1171   :  { %1918 = vrsqrt.f32 %v1246_v52 }
0x1174   :  { %v1473_v57 = vpop.permute.xlu1 %1472 }
0x1178   :  { %v1475_v33 = vpop.permute.xlu1 %1474 }
0x1179   :  { %v1486_v34 = vsel %vm316_vm2, %v1473_v57, %v1475_v33 }
0x117b   :  { %v1919_v53 = vpop.eup %1918 }
0x117c   :  { %v1248_v55 = vmul.f32 %v1919_v53, %v1240_v42  ;;  %v1479_v37 = vpop.permute.xlu1 %1478 }
0x117e   :  { %v1249_v58 = vmul.f32 %v1248_v55, %v1234_v54 }
0x1180   :  { %v1250_v59 = vadd.f32 %v1249_v58, %v1235_v56  ;;  %v1483_v41 = vpop.permute.xlu1 %1482 }
0x1182   :  { %v1251_v60 = vpack.c.bf16 %v1250_v59, %v1250_v59 }
0x1184   :  { %1769 = vmatmul.mubr.msk.bf16.vlgmr.msra.gmra.mrb[20].mxu0 %vm316_vm2, %v1251_v60 }
0x1185   :  { %1792 = vmatprep.mubr.msk.bf16.mxu0 %vm2074_vm0, %v2073_v0 }
0x1257   :  { %v1323_v1 = vpop.f32.mrb[20].mxu0 }
0x1258   :  { %v1324_v2 = vadd.f32 %v1323_v1, %v1261_v63  ;;  %v1770_v3 = vpop.f32.mrb[21].mxu0 }
0x1259   :  { %v1326_v4 = vpop.f32.mrb[22].mxu0 }
0x125a   :  { %v1329_v5 = vmax.f32 %v1324_v2, 0.0  ;;  %v1771_v6 = vpop.f32.mrb[23].mxu0 }
0x125c   :  { %v1330_v7 = vpack.c.bf16 %v1329_v5, %v1329_v5 }
0x125e   :  { %1781 = vmatmul.mubr.msk.bf16.vlgmr.msra.gmra.mrb[24].mxu1 %vm316_vm2, %v1330_v7 }
0x1331   :  { %v1402_v11 = vpop.f32.mrb[24].mxu1 }
0x1332   :  { %v1403_v13 = vadd.f32 %v1402_v11, %v1340_v10  ;;  %v1782_v15 = vpop.f32.mrb[25].mxu1 }
0x1333   :  { %v1405_v14 = vpop.f32.mrb[26].mxu1 }
0x1334   :  { %v1783_v16 = vpop.f32.mrb[27].mxu1  ;;  %v1408_v17 = vadd.f32 %v1403_v13, %v1250_v59 }
0x1336   :  { %v1411_v18 = vsel %vm316_vm2, %v1408_v17, 0.0 }
0x1337   :  { %1412 = vadd.xlane.f32.xlu0 %v1411_v18 }
0x134d   :  { %1470 = vrot.lane.b32.xlu0 %v1872_v19, %s2066_s1 }
0x13c4   :  { %v1413_v25 = vpop.xlane.xlu0 %1412 }
0x13c5   :  { %v1414_v26 = vmul.f32 0.015625, %v1413_v25 }
0x13c7   :  { %v1415_v28 = vsub.f32 %v1408_v17, %v1414_v26 }
0x13c8   :  { %v1471_v29 = vpop.permute.xlu0 %1470 }
0x13c9   :  { %v1416_v30 = vmul.f32 %v1415_v28, %v1415_v28  ;;  %v1485_v31 = vsel %vm316_vm2, %v1469_v27, %v1471_v29 }
0x13ca   :  { %1785 = vmatpush3.bf16.msra.mxu0 %v1485_v31 }
0x13cb   :  { %v1417_v21 = vsel %vm316_vm2, %v1416_v30, 0.0  ;;  %1786 = vmatprep.subr.bf16.mxu0 %v2073_v0 }
0x13cc   :  { %1418 = vadd.xlane.f32.xlu0 %v1417_v21 }
0x13ce   :  { %1787 = vmatpush3.bf16.msra.mxu0 %v1486_v34 }
0x13cf   :  { %1788 = vmatprep.subr.bf16.mxu0 %v2073_v0 }
0x13e2   :  { %1476 = vrot.lane.b32.xlu0 %v1878_v32, %s2066_s1 }
0x13e6   :  { %1480 = vrot.lane.b32.xlu0 %v1881_v35, %s2066_s1  ;;  %s2082_s1 = smov [#allocation11]  }
0x13e7   :  { %s1543_s10 = sshll.u32 %s2082_s1, 4  ;;  %s1544_s10 = int_to_ptr.vmem [resolvable:$true] %s1543_s10 }
0x13e8   :  { %s2032_s11 = scalar_lea.vmem %s1544_s10, 128  ;;  %p2037_p13 = scmp.lt.s32.totalorder %s1544_s10, %s1544_s10 }
0x13e9   :  { %p2033_p12 = scmp.ne.s32.totalorder %s1544_s10, %s2032_s11  ;;  %p2038_p0 = scmp.lt.s32.totalorder %s2032_s11, %s2032_s11 }
0x13eb   :  { %p2039_p1 = por %p2038_p0, %p2037_p13 }
0x13ed   :  { %p2040_p2 = pnand %p2039_p1, %p2033_p12 }
0x1459   :  { %v1419_v36 = vpop.xlane.xlu0 %1418 }
0x145a   :  { %v1420_v38 = vmul.f32 0.015625, %v1419_v36 }
0x145c   :  { %v1421_v39 = vadd.f32 1e-05, %v1420_v38 }
0x145d   :  { %v1477_v40 = vpop.permute.xlu0 %1476 }
0x145e   :  { %1920 = vrsqrt.f32 %v1421_v39  ;;  %v1487_v43 = vsel %vm316_vm2, %v1477_v40, %v1479_v37 }
0x145f   :  { %1789 = vmatpush3.bf16.msra.mxu0 %v1487_v43 }
0x1460   :  { %1790 = vmatprep.subr.bf16.mxu0 %v2073_v0 }
0x1461   :  { %v1481_v42 = vpop.permute.xlu0 %1480 }
0x1462   :  { %v1488_v12 = vsel %vm316_vm2, %v1481_v42, %v1483_v41 }
0x1463   :  { %1791 = vmatpush3.bf16.msra.mxu0 %v1488_v12 }
0x1468   :  { %v1921_v44 = vpop.eup %1920 }
0x1469   :  { %v1423_v45 = vmul.f32 %v1921_v44, %v1415_v28 }
0x146b   :  { %v1424_v9 = vmul.f32 %v1423_v45, %v1409_v47 }
0x146d   :  { %v1425_v49 = vadd.f32 %v1424_v9, %v1410_v48 }
0x146f   :  { %v1434_v46 = vpack.c.bf16 %v1425_v49, %v1425_v49 }
0x1471   :  { %1793 = vmatmul.mubr.msk.bf16.vlgmr.msra.gmra.mrb[24].mxu0 %vm316_vm2, %v1434_v46 }
0x1544   :  { %v1530_v51 = vpop.f32.mrb[24].mxu0 }
0x1545   :  { %v1531_v52 = vadd.f32 %v1530_v51, %v1435_v50  ;;  %v1794_v53 = vpop.f32.mrb[25].mxu0 }
0x1546   :  { %v1533_v0 = vpop.f32.mrb[26].mxu0 }
0x1547   :  { %1536 = vst [vmem:[#allocation11] sm:$0xff] %v1531_v52  ;;  %v1795_v54 = vpop.f32.mrb[27].mxu0 }
0x1548   :  { %2043 = shalt.err (!%p2040_p2)
}
0x1549   :  { %s2044_s14 = scalar_lea.hbm %s2388_s5, 128 }
0x154a   :  { %p2045_p3 = scmp.ne.s32.totalorder %s2388_s5, %s2044_s14  ;;  %p2048_p4 = scmp.lt.u32.totalorder %s2044_s14, %s2388_s5 }
0x154c   :  { %p2050_p5 = pnand %p2048_p4, %p2045_p3 }
0x154e   :  { %2053 = shalt.err (!%p2050_p5)
}
0x154f   :  { %1546 = dma.vmem_to_hbm [thread:$0]  %s1544_s10, 128, %s2388_s5, [#allocation4]  }
0x1550   :  { %2060 = dma.done.wait [#allocation4], 128  }
0x1551   :  { %2061 = vsyncadd [#allocation4], 4294967168 }
0x1552   :  { %1550 = vsyncpa [#allocation3], 1 }
0x1553   :  { %1551 = vsyncpa [#allocation6], 1 }
0x1554   :  { %1552 = vsyncpa [#allocation9], 1 }
0x1555   :  { %1553 = vsyncpa [#allocation4], 1 }

</bundles_post_ra>
